<compile_context>
chip_gen: v7x
topology: tpu7x:2x2x1
jax: 0.10.0
libtpu: 0.0.40
codegen_flags: <defaults>
</compile_context>

<pallas_src>
import math
import jax
import jax.numpy as jnp
from jax.experimental import pallas as pl
from jax.experimental.pallas import tpu as pltpu

# --- small, forward-consistent hyperparameters (scaled-down Config) ---
VOCAB = 64
D_MODEL = 32
NHEAD = 4
HEAD_DIM = D_MODEL // NHEAD
DIM_FF = 64
NUM_LAYERS = 2
MAX_SEQ = 16
EPS = 1e-5
V_PAD = ((VOCAB + 127) // 128) * 128       # lane-dense logits width (=128)
SMALL_W = 128                              # width of the packed small-param slab
ROWS_PER_LAYER = 8                         # bqkv, bo, b1, b2, g1, be1, g2, be2
FCB_ROW = ROWS_PER_LAYER * NUM_LAYERS      # fc_out bias row index in the slab


def _layernorm(x, gamma, beta):
    mu = jnp.mean(x, axis=-1, keepdims=True)
    var = jnp.mean((x - mu) ** 2, axis=-1, keepdims=True)
    return (x - mu) * jax.lax.rsqrt(var + EPS) * gamma + beta


def fused_forward_kernel(ids_ref, emb_ref, pe_ref, wqkv_ref, wo_ref,
                         w1_ref, w2_ref, fcw_ref, small_ref, out_ref):
    """Entire TextTransformer forward for the whole batch in one invocation."""
    BS = ids_ref.shape[0]            # B * S (flattened batch*seq rows)
    S = pe_ref.shape[0]
    V = emb_ref.shape[0]
    B = BS // S
    D, H, hd, FF = D_MODEL, NHEAD, HEAD_DIM, DIM_FF
    scale = 1.0 / math.sqrt(hd)

    sm = small_ref[...]              # (8*L+1, 128) f32 packed small params

    # ---- embedding lookup as a one-hot MXU matmul + positional encoding ----
    # TODO(synk): out-of-range ids silently give a zero row (no nn.Embedding check).
    ids = ids_ref[...]                                               # (BS, 1) int32
    onehot = (ids == jax.lax.broadcasted_iota(jnp.int32, (BS, V), 1)
              ).astype(jnp.bfloat16)                                 # (BS, V)
    x = jnp.dot(onehot, emb_ref[...],
                preferred_element_type=jnp.float32)                  # (BS, D) f32
    pe = pe_ref[...]                                                 # (S, D)
    x = x + (pe if B == 1 else jnp.concatenate([pe] * B, axis=0))
    # TODO(synk): train-mode dropout (p=0.5) has no in-kernel path; eval = identity.

    def split_heads(block):
        # (BS, H*hd) -> (H*B, S, hd); head h, batch b lands at row h*B + b.
        return jnp.concatenate(
            [block[:, h * hd:(h + 1) * hd].reshape(B, S, hd) for h in range(H)],
            axis=0).astype(jnp.bfloat16)

    def merge_heads(ctx):
        # (H*B, S, hd) -> (BS, D): lane-concat of heads, matching PyTorch layout.
        return jnp.concatenate(
            [ctx[h * B:(h + 1) * B].reshape(BS, hd) for h in range(H)], axis=-1)

    for l in range(NUM_LAYERS):
        r = ROWS_PER_LAYER * l
        bqkv = sm[r + 0:r + 1, :3 * D]
        bo   = sm[r + 1:r + 2, :D]
        b1   = sm[r + 2:r + 3, :FF]
        b2   = sm[r + 3:r + 4, :D]
        g1   = sm[r + 4:r + 5, :D]
        be1  = sm[r + 5:r + 6, :D]
        g2   = sm[r + 6:r + 7, :D]
        be2  = sm[r + 7:r + 8, :D]

        # ---- fused QKV projection: ONE (BS,D)x(D,3D) matmul ----
        qkv = jnp.dot(x.astype(jnp.bfloat16), wqkv_ref[l],
                      preferred_element_type=jnp.float32) + bqkv     # (BS, 3D)

        qh = split_heads(qkv[:, 0 * D:1 * D])                        # (H*B, S, hd)
        kh = split_heads(qkv[:, 1 * D:2 * D])
        vh = split_heads(qkv[:, 2 * D:3 * D])

        # ---- attention batched per (head, sequence); no mask needed ----
        s = jnp.einsum('nqd,nkd->nqk', qh, kh,
                       preferred_element_type=jnp.float32) * scale   # (H*B, S, S)
        s = s - jnp.max(s, axis=-1, keepdims=True)
        p = jnp.exp(s)
        # approx reciprocal runs on the EUP slot; use approx=False for strict parity.
        p = p * pl.reciprocal(jnp.sum(p, axis=-1, keepdims=True), approx=True)
        ctx = jnp.einsum('nqk,nkd->nqd', p.astype(jnp.bfloat16), vh,
                         preferred_element_type=jnp.float32)         # (H*B, S, hd)

        # ---- ONE output-projection matmul against un-split W_o.T ----
        attn = jnp.dot(merge_heads(ctx).astype(jnp.bfloat16), wo_ref[l],
                       preferred_element_type=jnp.float32) + bo      # (BS, D)

        # ---- residual + LayerNorm1 (post-norm), f32 ----
        x = _layernorm(x + attn, g1, be1)

        # ---- feed-forward: linear1 -> relu -> linear2 ----
        h1 = jnp.dot(x.astype(jnp.bfloat16), w1_ref[l],
                     preferred_element_type=jnp.float32) + b1
        h1 = jnp.maximum(h1, 0.0)
        ff = jnp.dot(h1.astype(jnp.bfloat16), w2_ref[l],
                     preferred_element_type=jnp.float32) + b2

        # ---- residual + LayerNorm2 ----
        x = _layernorm(x + ff, g2, be2)

    # ---- fc_out to lane-dense padded vocab (real logits are columns [:VOCAB]) ----
    out_ref[...] = jnp.dot(x.astype(jnp.bfloat16), fcw_ref[...],
                           preferred_element_type=jnp.float32) \
        + sm[FCB_ROW:FCB_ROW + 1, :]


def make_positional_encoding(max_len, d_model):
    position = jnp.arange(max_len, dtype=jnp.float32)[:, None]
    div_term = jnp.exp(jnp.arange(0, d_model, 2, dtype=jnp.float32)
                       * (-math.log(10000.0) / d_model))
    pe = jnp.zeros((max_len, d_model), dtype=jnp.float32)
    pe = pe.at[:, 0::2].set(jnp.sin(position * div_term))
    pe = pe.at[:, 1::2].set(jnp.cos(position * div_term))
    return pe


def init_params(key):
    """Parameters in PyTorch convention (out_features, in_features)."""
    def nrm(k, shape, scale=0.02):
        return (scale * jax.random.normal(k, shape)).astype(jnp.float32)

    keys = jax.random.split(key, 4 + NUM_LAYERS)
    params = {
        "embedding": nrm(keys[0], (VOCAB, D_MODEL), 1.0),
        "pe": make_positional_encoding(MAX_SEQ, D_MODEL),
        "fc_w": nrm(keys[1], (VOCAB, D_MODEL)),
        "fc_b": jnp.zeros((1, VOCAB), jnp.float32),
        "layers": [],
    }
    for i in range(NUM_LAYERS):
        lk = jax.random.split(keys[4 + i], 4)
        layer = (
            nrm(lk[0], (3 * D_MODEL, D_MODEL)),          # in_proj weight (qkv)
            jnp.zeros((1, 3 * D_MODEL), jnp.float32),    # in_proj bias
            nrm(lk[1], (D_MODEL, D_MODEL)),              # out_proj weight
            jnp.zeros((1, D_MODEL), jnp.float32),        # out_proj bias
            nrm(lk[2], (DIM_FF, D_MODEL)),               # linear1 weight
            jnp.zeros((1, DIM_FF), jnp.float32),         # linear1 bias
            nrm(lk[3], (D_MODEL, DIM_FF)),               # linear2 weight
            jnp.zeros((1, D_MODEL), jnp.float32),        # linear2 bias
            jnp.ones((1, D_MODEL), jnp.float32),         # norm1 gamma
            jnp.zeros((1, D_MODEL), jnp.float32),        # norm1 beta
            jnp.ones((1, D_MODEL), jnp.float32),         # norm2 gamma
            jnp.zeros((1, D_MODEL), jnp.float32),        # norm2 beta
        )
        params["layers"].append(layer)
    return params


def pack_params(params):
    """One-time wrapper-side repack:
       * weights pre-transposed to (in, out), stacked over layers, cast to bf16;
       * all 1-row params packed into one (8*L+1, 128) f32 slab;
       * fc_out padded to a lane-dense 128-wide output."""
    D, FF = D_MODEL, DIM_FF

    def row(v):
        v = jnp.asarray(v, jnp.float32).reshape(-1)
        return jnp.zeros((SMALL_W,), jnp.float32).at[:v.shape[0]].set(v)

    wqkv_l, wo_l, w1_l, w2_l, small_rows = [], [], [], [], []
    for (w_in, b_in, w_out, b_out, w1, b1, w2, b2, g1, be1, g2, be2) in params["layers"]:
        wqkv_l.append(w_in.T)                            # (D, 3D)
        wo_l.append(w_out.T)                             # (D, D)
        w1_l.append(w1.T)                                # (D, FF)
        w2_l.append(w2.T)                                # (FF, D)
        small_rows += [row(b_in), row(b_out), row(b1), row(b2),
                       row(g1), row(be1), row(g2), row(be2)]
    small_rows.append(row(params["fc_b"]))               # fc_out bias (last row)

    fcw_pad = jnp.zeros((V_PAD, D), jnp.float32).at[:VOCAB].set(params["fc_w"]).T

    return {
        "emb": params["embedding"].astype(jnp.bfloat16),   # (V, D)
        "pe": params["pe"],                                # (MAX_SEQ, D) f32
        "wqkv": jnp.stack(wqkv_l).astype(jnp.bfloat16),    # (L, D, 3D)
        "wo": jnp.stack(wo_l).astype(jnp.bfloat16),        # (L, D, D)
        "w1": jnp.stack(w1_l).astype(jnp.bfloat16),        # (L, D, FF)
        "w2": jnp.stack(w2_l).astype(jnp.bfloat16),        # (L, FF, D)
        "fc_w": fcw_pad.astype(jnp.bfloat16),              # (D, V_PAD)
        "small": jnp.stack(small_rows),                    # (8L+1, 128) f32
    }


@jax.jit
def text_transformer_forward(src, packed):
    B, S = src.shape
    BS = B * S
    ids = src.reshape(BS, 1).astype(jnp.int32)
    pe = packed["pe"][:S]                                  # (S, D)

    args = (ids, packed["emb"], pe, packed["wqkv"], packed["wo"],
            packed["w1"], packed["w2"], packed["fc_w"], packed["small"])
    vmem = pl.BlockSpec(memory_space=pltpu.MemorySpace.VMEM)
    out = pl.pallas_call(
        fused_forward_kernel,
        out_shape=jax.ShapeDtypeStruct((BS, V_PAD), jnp.float32),
        in_specs=[vmem] * len(args),
        out_specs=vmem,
    )(*args)
    return out[:, :VOCAB].reshape(B, S, VOCAB)


if __name__ == "__main__":
    key = jax.random.PRNGKey(0)
    pkey, skey = jax.random.split(key)
    params = init_params(pkey)
    packed = pack_params(params)

    B, S = 2, 8
    src = jax.random.randint(skey, (B, S), 0, VOCAB, dtype=jnp.int32)

    logits = text_transformer_forward(src, packed)
    jax.block_until_ready(logits)
    assert logits.shape == (B, S, VOCAB)
    assert bool(jnp.all(jnp.isfinite(logits)))
    print("KERNEL_OK")
</pallas_src>

<mosaic_0001>
module attributes {stable_mosaic.version = 11 : i64} {
  func.func @fused_forward_kernel(%arg0: memref<16x1xi32, #tpu.memory_space<vmem>>, %arg1: memref<64x32xbf16, #tpu.memory_space<vmem>>, %arg2: memref<8x32xf32, #tpu.memory_space<vmem>>, %arg3: memref<2x32x96xbf16, #tpu.memory_space<vmem>>, %arg4: memref<2x32x32xbf16, #tpu.memory_space<vmem>>, %arg5: memref<2x32x64xbf16, #tpu.memory_space<vmem>>, %arg6: memref<2x64x32xbf16, #tpu.memory_space<vmem>>, %arg7: memref<32x128xbf16, #tpu.memory_space<vmem>>, %arg8: memref<17x128xf32, #tpu.memory_space<vmem>>, %arg9: memref<16x128xf32, #tpu.memory_space<vmem>>) attributes {dimension_semantics = [], scalar_prefetch = 0 : i64, scratch_operands = 0 : i64, tpu.core_type = #tpu.core_type<tc>} {
    %c0 = arith.constant 0 : index
    %c0_0 = arith.constant 0 : index
    %0 = vector.load %arg8[%c0, %c0_0] : memref<17x128xf32, #tpu.memory_space<vmem>>, vector<17x128xf32>
    %c0_1 = arith.constant 0 : index
    %c0_2 = arith.constant 0 : index
    %1 = vector.load %arg0[%c0_1, %c0_2] : memref<16x1xi32, #tpu.memory_space<vmem>>, vector<16x1xi32>
    %2 = tpu.iota {dimensions = array<i32: 1>} : vector<16x64xi32>
    %3 = vector.broadcast %1 : vector<16x1xi32> to vector<16x64xi32>
    %4 = arith.cmpi eq, %3, %2 : vector<16x64xi32>
    %5 = arith.extui %4 : vector<16x64xi1> to vector<16x64xi32>
    %6 = arith.sitofp %5 : vector<16x64xi32> to vector<16x64xf32>
    %7 = arith.truncf %6 : vector<16x64xf32> to vector<16x64xbf16>
    %c0_3 = arith.constant 0 : index
    %c0_4 = arith.constant 0 : index
    %8 = vector.load %arg1[%c0_3, %c0_4] : memref<64x32xbf16, #tpu.memory_space<vmem>>, vector<64x32xbf16>
    %cst = arith.constant dense<0.000000e+00> : vector<16x32xf32>
    %9 = tpu.matmul %7, %8, %cst {dimension_numbers = #tpu.dot_dimension_numbers<[1], [0], [0], [1], [0, 0, 1, 1], [], []>} : vector<16x64xbf16>, vector<64x32xbf16>, vector<16x32xf32> -> vector<16x32xf32>
    %c0_5 = arith.constant 0 : index
    %c0_6 = arith.constant 0 : index
    %10 = vector.load %arg2[%c0_5, %c0_6] : memref<8x32xf32, #tpu.memory_space<vmem>>, vector<8x32xf32>
    %11 = tpu.concatenate %10, %10 in 0 : vector<8x32xf32>, vector<8x32xf32> -> vector<16x32xf32>
    %12 = arith.addf %9, %11 : vector<16x32xf32>
    %13 = vector.extract_strided_slice %0 {offsets = [0, 0], sizes = [1, 96], strides = [1, 1]} : vector<17x128xf32> to vector<1x96xf32>
    %14 = vector.extract_strided_slice %0 {offsets = [1, 0], sizes = [1, 32], strides = [1, 1]} : vector<17x128xf32> to vector<1x32xf32>
    %15 = vector.extract_strided_slice %0 {offsets = [2, 0], sizes = [1, 64], strides = [1, 1]} : vector<17x128xf32> to vector<1x64xf32>
    %16 = vector.extract_strided_slice %0 {offsets = [3, 0], sizes = [1, 32], strides = [1, 1]} : vector<17x128xf32> to vector<1x32xf32>
    %17 = vector.extract_strided_slice %0 {offsets = [4, 0], sizes = [1, 32], strides = [1, 1]} : vector<17x128xf32> to vector<1x32xf32>
    %18 = vector.extract_strided_slice %0 {offsets = [5, 0], sizes = [1, 32], strides = [1, 1]} : vector<17x128xf32> to vector<1x32xf32>
    %19 = vector.extract_strided_slice %0 {offsets = [6, 0], sizes = [1, 32], strides = [1, 1]} : vector<17x128xf32> to vector<1x32xf32>
    %20 = vector.extract_strided_slice %0 {offsets = [7, 0], sizes = [1, 32], strides = [1, 1]} : vector<17x128xf32> to vector<1x32xf32>
    %21 = arith.truncf %12 : vector<16x32xf32> to vector<16x32xbf16>
    %c0_7 = arith.constant 0 : index
    %c0_8 = arith.constant 0 : index
    %c0_9 = arith.constant 0 : index
    %22 = vector.load %arg3[%c0_7, %c0_8, %c0_9] : memref<2x32x96xbf16, #tpu.memory_space<vmem>>, vector<1x32x96xbf16>
    %23 = vector.shape_cast %22 : vector<1x32x96xbf16> to vector<32x96xbf16>
    %cst_10 = arith.constant dense<0.000000e+00> : vector<16x96xf32>
    %24 = tpu.matmul %21, %23, %cst_10 {dimension_numbers = #tpu.dot_dimension_numbers<[1], [0], [0], [1], [0, 0, 1, 1], [], []>} : vector<16x32xbf16>, vector<32x96xbf16>, vector<16x96xf32> -> vector<16x96xf32>
    %25 = vector.broadcast %13 : vector<1x96xf32> to vector<16x96xf32>
    %26 = arith.addf %24, %25 : vector<16x96xf32>
    %27 = vector.extract_strided_slice %26 {offsets = [0, 0], sizes = [16, 32], strides = [1, 1]} : vector<16x96xf32> to vector<16x32xf32>
    %28 = vector.extract_strided_slice %27 {offsets = [0, 0], sizes = [16, 8], strides = [1, 1]} : vector<16x32xf32> to vector<16x8xf32>
    %29 = vector.shape_cast %28 : vector<16x8xf32> to vector<2x8x8xf32>
    %30 = vector.extract_strided_slice %27 {offsets = [0, 8], sizes = [16, 8], strides = [1, 1]} : vector<16x32xf32> to vector<16x8xf32>
    %31 = vector.shape_cast %30 : vector<16x8xf32> to vector<2x8x8xf32>
    %32 = vector.extract_strided_slice %27 {offsets = [0, 16], sizes = [16, 8], strides = [1, 1]} : vector<16x32xf32> to vector<16x8xf32>
    %33 = vector.shape_cast %32 : vector<16x8xf32> to vector<2x8x8xf32>
    %34 = vector.extract_strided_slice %27 {offsets = [0, 24], sizes = [16, 8], strides = [1, 1]} : vector<16x32xf32> to vector<16x8xf32>
    %35 = vector.shape_cast %34 : vector<16x8xf32> to vector<2x8x8xf32>
    %36 = tpu.concatenate %29, %31, %33, %35 in 0 : vector<2x8x8xf32>, vector<2x8x8xf32>, vector<2x8x8xf32>, vector<2x8x8xf32> -> vector<8x8x8xf32>
    %37 = arith.truncf %36 : vector<8x8x8xf32> to vector<8x8x8xbf16>
    %38 = vector.extract_strided_slice %26 {offsets = [0, 32], sizes = [16, 32], strides = [1, 1]} : vector<16x96xf32> to vector<16x32xf32>
    %39 = vector.extract_strided_slice %38 {offsets = [0, 0], sizes = [16, 8], strides = [1, 1]} : vector<16x32xf32> to vector<16x8xf32>
    %40 = vector.shape_cast %39 : vector<16x8xf32> to vector<2x8x8xf32>
    %41 = vector.extract_strided_slice %38 {offsets = [0, 8], sizes = [16, 8], strides = [1, 1]} : vector<16x32xf32> to vector<16x8xf32>
    %42 = vector.shape_cast %41 : vector<16x8xf32> to vector<2x8x8xf32>
    %43 = vector.extract_strided_slice %38 {offsets = [0, 16], sizes = [16, 8], strides = [1, 1]} : vector<16x32xf32> to vector<16x8xf32>
    %44 = vector.shape_cast %43 : vector<16x8xf32> to vector<2x8x8xf32>
    %45 = vector.extract_strided_slice %38 {offsets = [0, 24], sizes = [16, 8], strides = [1, 1]} : vector<16x32xf32> to vector<16x8xf32>
    %46 = vector.shape_cast %45 : vector<16x8xf32> to vector<2x8x8xf32>
    %47 = tpu.concatenate %40, %42, %44, %46 in 0 : vector<2x8x8xf32>, vector<2x8x8xf32>, vector<2x8x8xf32>, vector<2x8x8xf32> -> vector<8x8x8xf32>
    %48 = arith.truncf %47 : vector<8x8x8xf32> to vector<8x8x8xbf16>
    %49 = vector.extract_strided_slice %26 {offsets = [0, 64], sizes = [16, 32], strides = [1, 1]} : vector<16x96xf32> to vector<16x32xf32>
    %50 = vector.extract_strided_slice %49 {offsets = [0, 0], sizes = [16, 8], strides = [1, 1]} : vector<16x32xf32> to vector<16x8xf32>
    %51 = vector.shape_cast %50 : vector<16x8xf32> to vector<2x8x8xf32>
    %52 = vector.extract_strided_slice %49 {offsets = [0, 8], sizes = [16, 8], strides = [1, 1]} : vector<16x32xf32> to vector<16x8xf32>
    %53 = vector.shape_cast %52 : vector<16x8xf32> to vector<2x8x8xf32>
    %54 = vector.extract_strided_slice %49 {offsets = [0, 16], sizes = [16, 8], strides = [1, 1]} : vector<16x32xf32> to vector<16x8xf32>
    %55 = vector.shape_cast %54 : vector<16x8xf32> to vector<2x8x8xf32>
    %56 = vector.extract_strided_slice %49 {offsets = [0, 24], sizes = [16, 8], strides = [1, 1]} : vector<16x32xf32> to vector<16x8xf32>
    %57 = vector.shape_cast %56 : vector<16x8xf32> to vector<2x8x8xf32>
    %58 = tpu.concatenate %51, %53, %55, %57 in 0 : vector<2x8x8xf32>, vector<2x8x8xf32>, vector<2x8x8xf32>, vector<2x8x8xf32> -> vector<8x8x8xf32>
    %59 = arith.truncf %58 : vector<8x8x8xf32> to vector<8x8x8xbf16>
    "tpu.trace_start"() <{level = 10 : i32, message = "nqd,nkd->nqk"}> : () -> ()
    %cst_11 = arith.constant dense<0.000000e+00> : vector<8x8x8xf32>
    %60 = tpu.matmul %37, %48, %cst_11 {dimension_numbers = #tpu.dot_dimension_numbers<[2], [2], [1], [1], [0, 0, 0, 1, 1, 1], [0], [0]>} : vector<8x8x8xbf16>, vector<8x8x8xbf16>, vector<8x8x8xf32> -> vector<8x8x8xf32>
    "tpu.trace_stop"() : () -> ()
    %cst_12 = arith.constant 0.353553385 : f32
    %61 = vector.broadcast %cst_12 : f32 to vector<8x8x8xf32>
    %62 = arith.mulf %60, %61 : vector<8x8x8xf32>
    %cst_13 = arith.constant dense<0xFF800000> : vector<8x8xf32>
    %63 = vector.multi_reduction <maximumf>, %62, %cst_13 [2] : vector<8x8x8xf32> to vector<8x8xf32>
    %64 = vector.shape_cast %63 : vector<8x8xf32> to vector<8x8x1xf32>
    %65 = vector.broadcast %64 : vector<8x8x1xf32> to vector<8x8x8xf32>
    %66 = arith.subf %62, %65 : vector<8x8x8xf32>
    %67 = math.exp %66 : vector<8x8x8xf32>
    %cst_14 = arith.constant dense<0.000000e+00> : vector<8x8xf32>
    %68 = vector.multi_reduction <add>, %67, %cst_14 [2] : vector<8x8x8xf32> to vector<8x8xf32>
    %69 = vector.shape_cast %68 : vector<8x8xf32> to vector<8x8x1xf32>
    %70 = tpu.reciprocal %69 {approx = true} : vector<8x8x1xf32> -> vector<8x8x1xf32>
    %71 = vector.broadcast %70 : vector<8x8x1xf32> to vector<8x8x8xf32>
    %72 = arith.mulf %67, %71 : vector<8x8x8xf32>
    %73 = arith.truncf %72 : vector<8x8x8xf32> to vector<8x8x8xbf16>
    "tpu.trace_start"() <{level = 10 : i32, message = "nqk,nkd->nqd"}> : () -> ()
    %cst_15 = arith.constant dense<0.000000e+00> : vector<8x8x8xf32>
    %74 = tpu.matmul %73, %59, %cst_15 {dimension_numbers = #tpu.dot_dimension_numbers<[2], [1], [1], [2], [0, 0, 0, 1, 1, 2], [0], [0]>} : vector<8x8x8xbf16>, vector<8x8x8xbf16>, vector<8x8x8xf32> -> vector<8x8x8xf32>
    "tpu.trace_stop"() : () -> ()
    %75 = vector.extract_strided_slice %74 {offsets = [0, 0, 0], sizes = [2, 8, 8], strides = [1, 1, 1]} : vector<8x8x8xf32> to vector<2x8x8xf32>
    %76 = vector.shape_cast %75 : vector<2x8x8xf32> to vector<16x8xf32>
    %77 = vector.extract_strided_slice %74 {offsets = [2, 0, 0], sizes = [2, 8, 8], strides = [1, 1, 1]} : vector<8x8x8xf32> to vector<2x8x8xf32>
    %78 = vector.shape_cast %77 : vector<2x8x8xf32> to vector<16x8xf32>
    %79 = vector.extract_strided_slice %74 {offsets = [4, 0, 0], sizes = [2, 8, 8], strides = [1, 1, 1]} : vector<8x8x8xf32> to vector<2x8x8xf32>
    %80 = vector.shape_cast %79 : vector<2x8x8xf32> to vector<16x8xf32>
    %81 = vector.extract_strided_slice %74 {offsets = [6, 0, 0], sizes = [2, 8, 8], strides = [1, 1, 1]} : vector<8x8x8xf32> to vector<2x8x8xf32>
    %82 = vector.shape_cast %81 : vector<2x8x8xf32> to vector<16x8xf32>
    %83 = tpu.concatenate %76, %78, %80, %82 in 1 : vector<16x8xf32>, vector<16x8xf32>, vector<16x8xf32>, vector<16x8xf32> -> vector<16x32xf32>
    %84 = arith.truncf %83 : vector<16x32xf32> to vector<16x32xbf16>
    %c0_16 = arith.constant 0 : index
    %c0_17 = arith.constant 0 : index
    %c0_18 = arith.constant 0 : index
    %85 = vector.load %arg4[%c0_16, %c0_17, %c0_18] : memref<2x32x32xbf16, #tpu.memory_space<vmem>>, vector<1x32x32xbf16>
    %86 = vector.shape_cast %85 : vector<1x32x32xbf16> to vector<32x32xbf16>
    %cst_19 = arith.constant dense<0.000000e+00> : vector<16x32xf32>
    %87 = tpu.matmul %84, %86, %cst_19 {dimension_numbers = #tpu.dot_dimension_numbers<[1], [0], [0], [1], [0, 0, 1, 1], [], []>} : vector<16x32xbf16>, vector<32x32xbf16>, vector<16x32xf32> -> vector<16x32xf32>
    %88 = vector.broadcast %14 : vector<1x32xf32> to vector<16x32xf32>
    %89 = arith.addf %87, %88 : vector<16x32xf32>
    %90 = arith.addf %12, %89 : vector<16x32xf32>
    %cst_20 = arith.constant dense<0.000000e+00> : vector<16xf32>
    %91 = vector.multi_reduction <add>, %90, %cst_20 [1] : vector<16x32xf32> to vector<16xf32>
    %92 = vector.shape_cast %91 : vector<16xf32> to vector<16x1xf32>
    %cst_21 = arith.constant 3.200000e+01 : f32
    %93 = vector.broadcast %cst_21 : f32 to vector<16x1xf32>
    %94 = arith.divf %92, %93 : vector<16x1xf32>
    %95 = vector.broadcast %94 : vector<16x1xf32> to vector<16x32xf32>
    %96 = arith.subf %90, %95 : vector<16x32xf32>
    %97 = arith.mulf %96, %96 : vector<16x32xf32>
    %cst_22 = arith.constant dense<0.000000e+00> : vector<16xf32>
    %98 = vector.multi_reduction <add>, %97, %cst_22 [1] : vector<16x32xf32> to vector<16xf32>
    %99 = vector.shape_cast %98 : vector<16xf32> to vector<16x1xf32>
    %cst_23 = arith.constant 3.200000e+01 : f32
    %100 = vector.broadcast %cst_23 : f32 to vector<16x1xf32>
    %101 = arith.divf %99, %100 : vector<16x1xf32>
    %102 = vector.broadcast %94 : vector<16x1xf32> to vector<16x32xf32>
    %103 = arith.subf %90, %102 : vector<16x32xf32>
    %cst_24 = arith.constant 9.99999974E-6 : f32
    %104 = vector.broadcast %cst_24 : f32 to vector<16x1xf32>
    %105 = arith.addf %101, %104 : vector<16x1xf32>
    %106 = math.rsqrt %105 : vector<16x1xf32>
    %107 = vector.broadcast %106 : vector<16x1xf32> to vector<16x32xf32>
    %108 = arith.mulf %103, %107 : vector<16x32xf32>
    %109 = vector.broadcast %17 : vector<1x32xf32> to vector<16x32xf32>
    %110 = arith.mulf %108, %109 : vector<16x32xf32>
    %111 = vector.broadcast %18 : vector<1x32xf32> to vector<16x32xf32>
    %112 = arith.addf %110, %111 : vector<16x32xf32>
    %113 = arith.truncf %112 : vector<16x32xf32> to vector<16x32xbf16>
    %c0_25 = arith.constant 0 : index
    %c0_26 = arith.constant 0 : index
    %c0_27 = arith.constant 0 : index
    %114 = vector.load %arg5[%c0_25, %c0_26, %c0_27] : memref<2x32x64xbf16, #tpu.memory_space<vmem>>, vector<1x32x64xbf16>
    %115 = vector.shape_cast %114 : vector<1x32x64xbf16> to vector<32x64xbf16>
    %cst_28 = arith.constant dense<0.000000e+00> : vector<16x64xf32>
    %116 = tpu.matmul %113, %115, %cst_28 {dimension_numbers = #tpu.dot_dimension_numbers<[1], [0], [0], [1], [0, 0, 1, 1], [], []>} : vector<16x32xbf16>, vector<32x64xbf16>, vector<16x64xf32> -> vector<16x64xf32>
    %117 = vector.broadcast %15 : vector<1x64xf32> to vector<16x64xf32>
    %118 = arith.addf %116, %117 : vector<16x64xf32>
    %cst_29 = arith.constant 0.000000e+00 : f32
    %119 = vector.broadcast %cst_29 : f32 to vector<16x64xf32>
    %120 = arith.maximumf %118, %119 : vector<16x64xf32>
    %121 = arith.truncf %120 : vector<16x64xf32> to vector<16x64xbf16>
    %c0_30 = arith.constant 0 : index
    %c0_31 = arith.constant 0 : index
    %c0_32 = arith.constant 0 : index
    %122 = vector.load %arg6[%c0_30, %c0_31, %c0_32] : memref<2x64x32xbf16, #tpu.memory_space<vmem>>, vector<1x64x32xbf16>
    %123 = vector.shape_cast %122 : vector<1x64x32xbf16> to vector<64x32xbf16>
    %cst_33 = arith.constant dense<0.000000e+00> : vector<16x32xf32>
    %124 = tpu.matmul %121, %123, %cst_33 {dimension_numbers = #tpu.dot_dimension_numbers<[1], [0], [0], [1], [0, 0, 1, 1], [], []>} : vector<16x64xbf16>, vector<64x32xbf16>, vector<16x32xf32> -> vector<16x32xf32>
    %125 = vector.broadcast %16 : vector<1x32xf32> to vector<16x32xf32>
    %126 = arith.addf %124, %125 : vector<16x32xf32>
    %127 = arith.addf %112, %126 : vector<16x32xf32>
    %cst_34 = arith.constant dense<0.000000e+00> : vector<16xf32>
    %128 = vector.multi_reduction <add>, %127, %cst_34 [1] : vector<16x32xf32> to vector<16xf32>
    %129 = vector.shape_cast %128 : vector<16xf32> to vector<16x1xf32>
    %cst_35 = arith.constant 3.200000e+01 : f32
    %130 = vector.broadcast %cst_35 : f32 to vector<16x1xf32>
    %131 = arith.divf %129, %130 : vector<16x1xf32>
    %132 = vector.broadcast %131 : vector<16x1xf32> to vector<16x32xf32>
    %133 = arith.subf %127, %132 : vector<16x32xf32>
    %134 = arith.mulf %133, %133 : vector<16x32xf32>
    %cst_36 = arith.constant dense<0.000000e+00> : vector<16xf32>
    %135 = vector.multi_reduction <add>, %134, %cst_36 [1] : vector<16x32xf32> to vector<16xf32>
    %136 = vector.shape_cast %135 : vector<16xf32> to vector<16x1xf32>
    %cst_37 = arith.constant 3.200000e+01 : f32
    %137 = vector.broadcast %cst_37 : f32 to vector<16x1xf32>
    %138 = arith.divf %136, %137 : vector<16x1xf32>
    %139 = vector.broadcast %131 : vector<16x1xf32> to vector<16x32xf32>
    %140 = arith.subf %127, %139 : vector<16x32xf32>
    %cst_38 = arith.constant 9.99999974E-6 : f32
    %141 = vector.broadcast %cst_38 : f32 to vector<16x1xf32>
    %142 = arith.addf %138, %141 : vector<16x1xf32>
    %143 = math.rsqrt %142 : vector<16x1xf32>
    %144 = vector.broadcast %143 : vector<16x1xf32> to vector<16x32xf32>
    %145 = arith.mulf %140, %144 : vector<16x32xf32>
    %146 = vector.broadcast %19 : vector<1x32xf32> to vector<16x32xf32>
    %147 = arith.mulf %145, %146 : vector<16x32xf32>
    %148 = vector.broadcast %20 : vector<1x32xf32> to vector<16x32xf32>
    %149 = arith.addf %147, %148 : vector<16x32xf32>
    %150 = vector.extract_strided_slice %0 {offsets = [8, 0], sizes = [1, 96], strides = [1, 1]} : vector<17x128xf32> to vector<1x96xf32>
    %151 = vector.extract_strided_slice %0 {offsets = [9, 0], sizes = [1, 32], strides = [1, 1]} : vector<17x128xf32> to vector<1x32xf32>
    %152 = vector.extract_strided_slice %0 {offsets = [10, 0], sizes = [1, 64], strides = [1, 1]} : vector<17x128xf32> to vector<1x64xf32>
    %153 = vector.extract_strided_slice %0 {offsets = [11, 0], sizes = [1, 32], strides = [1, 1]} : vector<17x128xf32> to vector<1x32xf32>
    %154 = vector.extract_strided_slice %0 {offsets = [12, 0], sizes = [1, 32], strides = [1, 1]} : vector<17x128xf32> to vector<1x32xf32>
    %155 = vector.extract_strided_slice %0 {offsets = [13, 0], sizes = [1, 32], strides = [1, 1]} : vector<17x128xf32> to vector<1x32xf32>
    %156 = vector.extract_strided_slice %0 {offsets = [14, 0], sizes = [1, 32], strides = [1, 1]} : vector<17x128xf32> to vector<1x32xf32>
    %157 = vector.extract_strided_slice %0 {offsets = [15, 0], sizes = [1, 32], strides = [1, 1]} : vector<17x128xf32> to vector<1x32xf32>
    %158 = arith.truncf %149 : vector<16x32xf32> to vector<16x32xbf16>
    %c1 = arith.constant 1 : index
    %c0_39 = arith.constant 0 : index
    %c0_40 = arith.constant 0 : index
    %159 = vector.load %arg3[%c1, %c0_39, %c0_40] : memref<2x32x96xbf16, #tpu.memory_space<vmem>>, vector<1x32x96xbf16>
    %160 = vector.shape_cast %159 : vector<1x32x96xbf16> to vector<32x96xbf16>
    %cst_41 = arith.constant dense<0.000000e+00> : vector<16x96xf32>
    %161 = tpu.matmul %158, %160, %cst_41 {dimension_numbers = #tpu.dot_dimension_numbers<[1], [0], [0], [1], [0, 0, 1, 1], [], []>} : vector<16x32xbf16>, vector<32x96xbf16>, vector<16x96xf32> -> vector<16x96xf32>
    %162 = vector.broadcast %150 : vector<1x96xf32> to vector<16x96xf32>
    %163 = arith.addf %161, %162 : vector<16x96xf32>
    %164 = vector.extract_strided_slice %163 {offsets = [0, 0], sizes = [16, 32], strides = [1, 1]} : vector<16x96xf32> to vector<16x32xf32>
    %165 = vector.extract_strided_slice %164 {offsets = [0, 0], sizes = [16, 8], strides = [1, 1]} : vector<16x32xf32> to vector<16x8xf32>
    %166 = vector.shape_cast %165 : vector<16x8xf32> to vector<2x8x8xf32>
    %167 = vector.extract_strided_slice %164 {offsets = [0, 8], sizes = [16, 8], strides = [1, 1]} : vector<16x32xf32> to vector<16x8xf32>
    %168 = vector.shape_cast %167 : vector<16x8xf32> to vector<2x8x8xf32>
    %169 = vector.extract_strided_slice %164 {offsets = [0, 16], sizes = [16, 8], strides = [1, 1]} : vector<16x32xf32> to vector<16x8xf32>
    %170 = vector.shape_cast %169 : vector<16x8xf32> to vector<2x8x8xf32>
    %171 = vector.extract_strided_slice %164 {offsets = [0, 24], sizes = [16, 8], strides = [1, 1]} : vector<16x32xf32> to vector<16x8xf32>
    %172 = vector.shape_cast %171 : vector<16x8xf32> to vector<2x8x8xf32>
    %173 = tpu.concatenate %166, %168, %170, %172 in 0 : vector<2x8x8xf32>, vector<2x8x8xf32>, vector<2x8x8xf32>, vector<2x8x8xf32> -> vector<8x8x8xf32>
    %174 = arith.truncf %173 : vector<8x8x8xf32> to vector<8x8x8xbf16>
    %175 = vector.extract_strided_slice %163 {offsets = [0, 32], sizes = [16, 32], strides = [1, 1]} : vector<16x96xf32> to vector<16x32xf32>
    %176 = vector.extract_strided_slice %175 {offsets = [0, 0], sizes = [16, 8], strides = [1, 1]} : vector<16x32xf32> to vector<16x8xf32>
    %177 = vector.shape_cast %176 : vector<16x8xf32> to vector<2x8x8xf32>
    %178 = vector.extract_strided_slice %175 {offsets = [0, 8], sizes = [16, 8], strides = [1, 1]} : vector<16x32xf32> to vector<16x8xf32>
    %179 = vector.shape_cast %178 : vector<16x8xf32> to vector<2x8x8xf32>
    %180 = vector.extract_strided_slice %175 {offsets = [0, 16], sizes = [16, 8], strides = [1, 1]} : vector<16x32xf32> to vector<16x8xf32>
    %181 = vector.shape_cast %180 : vector<16x8xf32> to vector<2x8x8xf32>
    %182 = vector.extract_strided_slice %175 {offsets = [0, 24], sizes = [16, 8], strides = [1, 1]} : vector<16x32xf32> to vector<16x8xf32>
    %183 = vector.shape_cast %182 : vector<16x8xf32> to vector<2x8x8xf32>
    %184 = tpu.concatenate %177, %179, %181, %183 in 0 : vector<2x8x8xf32>, vector<2x8x8xf32>, vector<2x8x8xf32>, vector<2x8x8xf32> -> vector<8x8x8xf32>
    %185 = arith.truncf %184 : vector<8x8x8xf32> to vector<8x8x8xbf16>
    %186 = vector.extract_strided_slice %163 {offsets = [0, 64], sizes = [16, 32], strides = [1, 1]} : vector<16x96xf32> to vector<16x32xf32>
    %187 = vector.extract_strided_slice %186 {offsets = [0, 0], sizes = [16, 8], strides = [1, 1]} : vector<16x32xf32> to vector<16x8xf32>
    %188 = vector.shape_cast %187 : vector<16x8xf32> to vector<2x8x8xf32>
    %189 = vector.extract_strided_slice %186 {offsets = [0, 8], sizes = [16, 8], strides = [1, 1]} : vector<16x32xf32> to vector<16x8xf32>
    %190 = vector.shape_cast %189 : vector<16x8xf32> to vector<2x8x8xf32>
    %191 = vector.extract_strided_slice %186 {offsets = [0, 16], sizes = [16, 8], strides = [1, 1]} : vector<16x32xf32> to vector<16x8xf32>
    %192 = vector.shape_cast %191 : vector<16x8xf32> to vector<2x8x8xf32>
    %193 = vector.extract_strided_slice %186 {offsets = [0, 24], sizes = [16, 8], strides = [1, 1]} : vector<16x32xf32> to vector<16x8xf32>
    %194 = vector.shape_cast %193 : vector<16x8xf32> to vector<2x8x8xf32>
    %195 = tpu.concatenate %188, %190, %192, %194 in 0 : vector<2x8x8xf32>, vector<2x8x8xf32>, vector<2x8x8xf32>, vector<2x8x8xf32> -> vector<8x8x8xf32>
    %196 = arith.truncf %195 : vector<8x8x8xf32> to vector<8x8x8xbf16>
    "tpu.trace_start"() <{level = 10 : i32, message = "nqd,nkd->nqk"}> : () -> ()
    %cst_42 = arith.constant dense<0.000000e+00> : vector<8x8x8xf32>
    %197 = tpu.matmul %174, %185, %cst_42 {dimension_numbers = #tpu.dot_dimension_numbers<[2], [2], [1], [1], [0, 0, 0, 1, 1, 1], [0], [0]>} : vector<8x8x8xbf16>, vector<8x8x8xbf16>, vector<8x8x8xf32> -> vector<8x8x8xf32>
    "tpu.trace_stop"() : () -> ()
    %cst_43 = arith.constant 0.353553385 : f32
    %198 = vector.broadcast %cst_43 : f32 to vector<8x8x8xf32>
    %199 = arith.mulf %197, %198 : vector<8x8x8xf32>
    %cst_44 = arith.constant dense<0xFF800000> : vector<8x8xf32>
    %200 = vector.multi_reduction <maximumf>, %199, %cst_44 [2] : vector<8x8x8xf32> to vector<8x8xf32>
    %201 = vector.shape_cast %200 : vector<8x8xf32> to vector<8x8x1xf32>
    %202 = vector.broadcast %201 : vector<8x8x1xf32> to vector<8x8x8xf32>
    %203 = arith.subf %199, %202 : vector<8x8x8xf32>
    %204 = math.exp %203 : vector<8x8x8xf32>
    %cst_45 = arith.constant dense<0.000000e+00> : vector<8x8xf32>
    %205 = vector.multi_reduction <add>, %204, %cst_45 [2] : vector<8x8x8xf32> to vector<8x8xf32>
    %206 = vector.shape_cast %205 : vector<8x8xf32> to vector<8x8x1xf32>
    %207 = tpu.reciprocal %206 {approx = true} : vector<8x8x1xf32> -> vector<8x8x1xf32>
    %208 = vector.broadcast %207 : vector<8x8x1xf32> to vector<8x8x8xf32>
    %209 = arith.mulf %204, %208 : vector<8x8x8xf32>
    %210 = arith.truncf %209 : vector<8x8x8xf32> to vector<8x8x8xbf16>
    "tpu.trace_start"() <{level = 10 : i32, message = "nqk,nkd->nqd"}> : () -> ()
    %cst_46 = arith.constant dense<0.000000e+00> : vector<8x8x8xf32>
    %211 = tpu.matmul %210, %196, %cst_46 {dimension_numbers = #tpu.dot_dimension_numbers<[2], [1], [1], [2], [0, 0, 0, 1, 1, 2], [0], [0]>} : vector<8x8x8xbf16>, vector<8x8x8xbf16>, vector<8x8x8xf32> -> vector<8x8x8xf32>
    "tpu.trace_stop"() : () -> ()
    %212 = vector.extract_strided_slice %211 {offsets = [0, 0, 0], sizes = [2, 8, 8], strides = [1, 1, 1]} : vector<8x8x8xf32> to vector<2x8x8xf32>
    %213 = vector.shape_cast %212 : vector<2x8x8xf32> to vector<16x8xf32>
    %214 = vector.extract_strided_slice %211 {offsets = [2, 0, 0], sizes = [2, 8, 8], strides = [1, 1, 1]} : vector<8x8x8xf32> to vector<2x8x8xf32>
    %215 = vector.shape_cast %214 : vector<2x8x8xf32> to vector<16x8xf32>
    %216 = vector.extract_strided_slice %211 {offsets = [4, 0, 0], sizes = [2, 8, 8], strides = [1, 1, 1]} : vector<8x8x8xf32> to vector<2x8x8xf32>
    %217 = vector.shape_cast %216 : vector<2x8x8xf32> to vector<16x8xf32>
    %218 = vector.extract_strided_slice %211 {offsets = [6, 0, 0], sizes = [2, 8, 8], strides = [1, 1, 1]} : vector<8x8x8xf32> to vector<2x8x8xf32>
    %219 = vector.shape_cast %218 : vector<2x8x8xf32> to vector<16x8xf32>
    %220 = tpu.concatenate %213, %215, %217, %219 in 1 : vector<16x8xf32>, vector<16x8xf32>, vector<16x8xf32>, vector<16x8xf32> -> vector<16x32xf32>
    %221 = arith.truncf %220 : vector<16x32xf32> to vector<16x32xbf16>
    %c1_47 = arith.constant 1 : index
    %c0_48 = arith.constant 0 : index
    %c0_49 = arith.constant 0 : index
    %222 = vector.load %arg4[%c1_47, %c0_48, %c0_49] : memref<2x32x32xbf16, #tpu.memory_space<vmem>>, vector<1x32x32xbf16>
    %223 = vector.shape_cast %222 : vector<1x32x32xbf16> to vector<32x32xbf16>
    %cst_50 = arith.constant dense<0.000000e+00> : vector<16x32xf32>
    %224 = tpu.matmul %221, %223, %cst_50 {dimension_numbers = #tpu.dot_dimension_numbers<[1], [0], [0], [1], [0, 0, 1, 1], [], []>} : vector<16x32xbf16>, vector<32x32xbf16>, vector<16x32xf32> -> vector<16x32xf32>
    %225 = vector.broadcast %151 : vector<1x32xf32> to vector<16x32xf32>
    %226 = arith.addf %224, %225 : vector<16x32xf32>
    %227 = arith.addf %149, %226 : vector<16x32xf32>
    %cst_51 = arith.constant dense<0.000000e+00> : vector<16xf32>
    %228 = vector.multi_reduction <add>, %227, %cst_51 [1] : vector<16x32xf32> to vector<16xf32>
    %229 = vector.shape_cast %228 : vector<16xf32> to vector<16x1xf32>
    %cst_52 = arith.constant 3.200000e+01 : f32
    %230 = vector.broadcast %cst_52 : f32 to vector<16x1xf32>
    %231 = arith.divf %229, %230 : vector<16x1xf32>
    %232 = vector.broadcast %231 : vector<16x1xf32> to vector<16x32xf32>
    %233 = arith.subf %227, %232 : vector<16x32xf32>
    %234 = arith.mulf %233, %233 : vector<16x32xf32>
    %cst_53 = arith.constant dense<0.000000e+00> : vector<16xf32>
    %235 = vector.multi_reduction <add>, %234, %cst_53 [1] : vector<16x32xf32> to vector<16xf32>
    %236 = vector.shape_cast %235 : vector<16xf32> to vector<16x1xf32>
    %cst_54 = arith.constant 3.200000e+01 : f32
    %237 = vector.broadcast %cst_54 : f32 to vector<16x1xf32>
    %238 = arith.divf %236, %237 : vector<16x1xf32>
    %239 = vector.broadcast %231 : vector<16x1xf32> to vector<16x32xf32>
    %240 = arith.subf %227, %239 : vector<16x32xf32>
    %cst_55 = arith.constant 9.99999974E-6 : f32
    %241 = vector.broadcast %cst_55 : f32 to vector<16x1xf32>
    %242 = arith.addf %238, %241 : vector<16x1xf32>
    %243 = math.rsqrt %242 : vector<16x1xf32>
    %244 = vector.broadcast %243 : vector<16x1xf32> to vector<16x32xf32>
    %245 = arith.mulf %240, %244 : vector<16x32xf32>
    %246 = vector.broadcast %154 : vector<1x32xf32> to vector<16x32xf32>
    %247 = arith.mulf %245, %246 : vector<16x32xf32>
    %248 = vector.broadcast %155 : vector<1x32xf32> to vector<16x32xf32>
    %249 = arith.addf %247, %248 : vector<16x32xf32>
    %250 = arith.truncf %249 : vector<16x32xf32> to vector<16x32xbf16>
    %c1_56 = arith.constant 1 : index
    %c0_57 = arith.constant 0 : index
    %c0_58 = arith.constant 0 : index
    %251 = vector.load %arg5[%c1_56, %c0_57, %c0_58] : memref<2x32x64xbf16, #tpu.memory_space<vmem>>, vector<1x32x64xbf16>
    %252 = vector.shape_cast %251 : vector<1x32x64xbf16> to vector<32x64xbf16>
    %cst_59 = arith.constant dense<0.000000e+00> : vector<16x64xf32>
    %253 = tpu.matmul %250, %252, %cst_59 {dimension_numbers = #tpu.dot_dimension_numbers<[1], [0], [0], [1], [0, 0, 1, 1], [], []>} : vector<16x32xbf16>, vector<32x64xbf16>, vector<16x64xf32> -> vector<16x64xf32>
    %254 = vector.broadcast %152 : vector<1x64xf32> to vector<16x64xf32>
    %255 = arith.addf %253, %254 : vector<16x64xf32>
    %cst_60 = arith.constant 0.000000e+00 : f32
    %256 = vector.broadcast %cst_60 : f32 to vector<16x64xf32>
    %257 = arith.maximumf %255, %256 : vector<16x64xf32>
    %258 = arith.truncf %257 : vector<16x64xf32> to vector<16x64xbf16>
    %c1_61 = arith.constant 1 : index
    %c0_62 = arith.constant 0 : index
    %c0_63 = arith.constant 0 : index
    %259 = vector.load %arg6[%c1_61, %c0_62, %c0_63] : memref<2x64x32xbf16, #tpu.memory_space<vmem>>, vector<1x64x32xbf16>
    %260 = vector.shape_cast %259 : vector<1x64x32xbf16> to vector<64x32xbf16>
    %cst_64 = arith.constant dense<0.000000e+00> : vector<16x32xf32>
    %261 = tpu.matmul %258, %260, %cst_64 {dimension_numbers = #tpu.dot_dimension_numbers<[1], [0], [0], [1], [0, 0, 1, 1], [], []>} : vector<16x64xbf16>, vector<64x32xbf16>, vector<16x32xf32> -> vector<16x32xf32>
    %262 = vector.broadcast %153 : vector<1x32xf32> to vector<16x32xf32>
    %263 = arith.addf %261, %262 : vector<16x32xf32>
    %264 = arith.addf %249, %263 : vector<16x32xf32>
    %cst_65 = arith.constant dense<0.000000e+00> : vector<16xf32>
    %265 = vector.multi_reduction <add>, %264, %cst_65 [1] : vector<16x32xf32> to vector<16xf32>
    %266 = vector.shape_cast %265 : vector<16xf32> to vector<16x1xf32>
    %cst_66 = arith.constant 3.200000e+01 : f32
    %267 = vector.broadcast %cst_66 : f32 to vector<16x1xf32>
    %268 = arith.divf %266, %267 : vector<16x1xf32>
    %269 = vector.broadcast %268 : vector<16x1xf32> to vector<16x32xf32>
    %270 = arith.subf %264, %269 : vector<16x32xf32>
    %271 = arith.mulf %270, %270 : vector<16x32xf32>
    %cst_67 = arith.constant dense<0.000000e+00> : vector<16xf32>
    %272 = vector.multi_reduction <add>, %271, %cst_67 [1] : vector<16x32xf32> to vector<16xf32>
    %273 = vector.shape_cast %272 : vector<16xf32> to vector<16x1xf32>
    %cst_68 = arith.constant 3.200000e+01 : f32
    %274 = vector.broadcast %cst_68 : f32 to vector<16x1xf32>
    %275 = arith.divf %273, %274 : vector<16x1xf32>
    %276 = vector.broadcast %268 : vector<16x1xf32> to vector<16x32xf32>
    %277 = arith.subf %264, %276 : vector<16x32xf32>
    %cst_69 = arith.constant 9.99999974E-6 : f32
    %278 = vector.broadcast %cst_69 : f32 to vector<16x1xf32>
    %279 = arith.addf %275, %278 : vector<16x1xf32>
    %280 = math.rsqrt %279 : vector<16x1xf32>
    %281 = vector.broadcast %280 : vector<16x1xf32> to vector<16x32xf32>
    %282 = arith.mulf %277, %281 : vector<16x32xf32>
    %283 = vector.broadcast %156 : vector<1x32xf32> to vector<16x32xf32>
    %284 = arith.mulf %282, %283 : vector<16x32xf32>
    %285 = vector.broadcast %157 : vector<1x32xf32> to vector<16x32xf32>
    %286 = arith.addf %284, %285 : vector<16x32xf32>
    %287 = arith.truncf %286 : vector<16x32xf32> to vector<16x32xbf16>
    %c0_70 = arith.constant 0 : index
    %c0_71 = arith.constant 0 : index
    %288 = vector.load %arg7[%c0_70, %c0_71] : memref<32x128xbf16, #tpu.memory_space<vmem>>, vector<32x128xbf16>
    %cst_72 = arith.constant dense<0.000000e+00> : vector<16x128xf32>
    %289 = tpu.matmul %287, %288, %cst_72 {dimension_numbers = #tpu.dot_dimension_numbers<[1], [0], [0], [1], [0, 0, 1, 1], [], []>} : vector<16x32xbf16>, vector<32x128xbf16>, vector<16x128xf32> -> vector<16x128xf32>
    %290 = vector.extract_strided_slice %0 {offsets = [16, 0], sizes = [1, 128], strides = [1, 1]} : vector<17x128xf32> to vector<1x128xf32>
    %291 = vector.broadcast %290 : vector<1x128xf32> to vector<16x128xf32>
    %292 = arith.addf %289, %291 : vector<16x128xf32>
    %c0_73 = arith.constant 0 : index
    %c0_74 = arith.constant 0 : index
    %293 = vector.load %arg9[%c0_73, %c0_74] : memref<16x128xf32, #tpu.memory_space<vmem>>, vector<16x128xf32>
    tpu.vector_store %arg9[%c0_73, %c0_74], %292 {strides = array<i32>} : memref<16x128xf32, #tpu.memory_space<vmem>>, vector<16x128xf32>,
    return
  }
}

</mosaic_0001>

<bundles_post_ra>
// kernel: text_transformer_forward.1
= control target key start
LH: loop header
LB: loop body
LE: loop exit
PB: predicated region body
PF: predicated region fallthrough
CT: control target
= control target key end

     0   :  { %14 = vsyncpa [#allocation3], 0  ;;  %s3498_s30 = smov [#allocation2]   ;;  %s4195_s0 = inlined_call_operand.vmem [shape: s32[16,1], index: 0, kind: input, shape index: {}]   ;;  %s4196_s1 = inlined_call_operand.vmem [shape: bf16[64,32], index: 1, kind: input, shape index: {}]   ;;  %s4197_s2 = inlined_call_operand.vmem [shape: f32[8,32], index: 2, kind: input, shape index: {}]   ;;  %s4198_s3 = inlined_call_operand.vmem [shape: bf16[2,32,96], index: 3, kind: input, shape index: {}]   ;;  %s4199_s4 = inlined_call_operand.vmem [shape: bf16[2,32,32], index: 4, kind: input, shape index: {}]   ;;  %s4200_s5 = inlined_call_operand.vmem [shape: bf16[2,32,64], index: 5, kind: input, shape index: {}]   ;;  %s4201_s6 = inlined_call_operand.vmem [shape: bf16[2,64,32], index: 6, kind: input, shape index: {}]   ;;  %s4202_s7 = inlined_call_operand.hbm [shape: bf16[32,128], index: 7, kind: input, shape index: {}]   ;;  %s4203_s8 = inlined_call_operand.vmem [shape: f32[17,128], index: 8, kind: input, shape index: {}]   ;;  %s4204_s9 = inlined_call_operand.vmem [shape: f32[16,128], index: 9, kind: output, shape index: {}]  }
   0x1   :  { %s34_s10 = sshll.u32 %s3498_s30, 4  ;;  %s3474_s13 = scalar_lea.hbm %s4202_s7, 256  ;;  %s35_s10 = int_to_ptr.vmem [resolvable:$true] %s34_s10 }
   0x2   :  { %p3475_p0 = scmp.ne.s32.totalorder %s4202_s7, %s3474_s13  ;;  %p3478_p1 = scmp.lt.u32.totalorder %s3474_s13, %s4202_s7 }
   0x4   :  { %p3480_p2 = pnand %p3478_p1, %p3475_p0 }
   0x6   :  { %3483 = shalt.err (!%p3480_p2)
}
   0x7   :  { %s3484_s18 = scalar_lea.vmem %s35_s10, 256  ;;  %p3489_p4 = scmp.lt.s32.totalorder %s35_s10, %s35_s10 }
   0x8   :  { %p3485_p3 = scmp.ne.s32.totalorder %s35_s10, %s3484_s18  ;;  %p3490_p5 = scmp.lt.s32.totalorder %s3484_s18, %s3484_s18 }
   0xa   :  { %p3491_p6 = por %p3490_p5, %p3489_p4 }
   0xc   :  { %p3492_p7 = pnand %p3491_p6, %p3485_p3 }
   0xe   :  { %3495 = shalt.err (!%p3492_p7)
}
   0xf   :  { %s3499_s19 = smov 64   ;;  %s3500_s20 = smov 4  }
  0x10   :  { %40 = dma.hbm_to_vmem [thread:$0]  %s4202_s7, 256, %s35_s10, [#allocation3], %s3499_s19, %s3499_s19, %s3500_s20  }
  0x11   :  { %3496 = dma.done.wait [#allocation3], 256  }
  0x12   :  { %3497 = vsyncadd [#allocation3], 4294967040  ;;  %v3501_v0 = vmov 0   ;;  %v3502_v1 = vmov 0.0   ;;  %v50_v2 = vld [vmem:[%s4195_s0] sm:$0xff]  ;;  %v51_v4 = vld [vmem:[%s4195_s0 + $0x8] sm:$0xff]  ;;  %v52_v8 = vlaneseq }
  0x13   :  { %3307 = vset.pattern.permute.xlu0 %v3501_v0  ;;  %3010 = vmatprep.subr.bf16.mxu0 %v3502_v1  ;;  %v3368_v3 = vld [vmem:[%s4196_s1] sm:$0xff]   ;;  %v3369_v5 = vld [vmem:[%s4196_s1 + $0x8] sm:$0xff]   ;;  %v3370_v6 = vld [vmem:[%s4196_s1 + $0x10] sm:$0xff]   ;;  %vm3503_vm0 = vmmov 0   ;;  %vm100_vm3 = vcmask 523264   ;;  %vm166_vm4 = vcmask 261120  }
  0x14   :  { %3022 = vmatprep.subr.bf16.mxu1 %v3502_v1  ;;  %55 = vperm.xlu0 %3307, %v50_v2   ;;  %v3371_v7 = vld [vmem:[%s4196_s1 + $0x18] sm:$0xff]   ;;  %v53_v9 = vand.u32 127, %v52_v8  ;;  %v3372_v15 = vld [vmem:[%s4198_s3] sm:$0xff]   ;;  %v3373_v16 = vld [vmem:[%s4198_s3 + $0x8] sm:$0xff]   ;;  %v3628_v25 = vshrl.u32 %v52_v8, 7  ;;  %s3504_s18 = smov 104  }
  0x15   :  { %3011 = vmatpush3.bf16.msra.mxu0 %v3368_v3  ;;  %3018 = vmatprep.mubr.msk.bf16.mxu0 %vm3503_vm0, %v3502_v1  ;;  %v75_v17 = vld [vmem:[%s4197_s2] sm:$0xff]  ;;  %s3505_s20 = smov 120   ;;  %s3506_s21 = smov 96   ;;  %vm242_vm5 = vcmask 64512   ;;  %vm741_vm6 = vcmask 1043456   ;;  %vm1147_vm7 = vcmask 130048  }
  0x16   :  { %3012 = vmatprep.subr.bf16.mxu0 %v3502_v1  ;;  %3026 = vmatprep.mubr.msk.bf16.mxu1 %vm3503_vm0, %v3502_v1  ;;  %v152_v26 = vsub.s32 0, %v3628_v25  ;;  %v3634_v27 = vld [vmem:[%s4203_s8] sm:$0xff]  ;;  %s3507_s22 = smov 112   ;;  %s3508_s23 = smov 8   ;;  %vm1150_vm8 = vcmask 195584  }
  0x17   :  { %3023 = vmatpush3.bf16.msra.mxu1 %v3372_v15  ;;  %s3509_s7 = smov 16   ;;  %s3510_s28 = smov 24  }
  0x18   :  { %58 = vperm.xlu0 %3307, %v51_v4   ;;  %3024 = vmatprep.subr.bf16.mxu1 %v3502_v1  ;;  %v153_v28 = vrot.slane %v3634_v27, %v152_v26 }
  0x19   :  { %3013 = vmatpush3.bf16.msra.mxu0 %v3369_v5 }
  0x1a   :  { %3014 = vmatprep.subr.bf16.mxu0 %v3502_v1 }
  0x1b   :  { %3025 = vmatpush3.bf16.msra.mxu1 %v3373_v16 }
  0x1c   :  { %3030 = vmatprep.subr.bf16.mxu1 %v3502_v1 }
  0x1d   :  { %3015 = vmatpush3.bf16.msra.mxu0 %v3370_v6 }
  0x1e   :  { %3016 = vmatprep.subr.bf16.mxu0 %v3502_v1 }
  0x21   :  { %3017 = vmatpush3.bf16.msra.mxu0 %v3371_v7 }
  0x22   :  { %3036 = vmatprep.subr.bf16.mxu0 %v3502_v1 }
  0x93   :  { %v56_v10 = vpop.permute.xlu0 %55 }
  0x94   :  { %vm60_vm1 = vcmp.eq.s32.totalorder %v56_v10, %v53_v9 }
  0x95   :  { %v2819_v12 = vsel %vm60_vm1, 1.0, %v3502_v1 }
  0x97   :  { %v59_v11 = vpop.permute.xlu0 %58 }
  0x98   :  { %vm61_vm2 = vcmp.eq.s32.totalorder %v59_v11, %v53_v9 }
  0x99   :  { %v2820_v13 = vsel %vm61_vm2, 1.0, %v3502_v1 }
  0x9a   :  { %v66_v14 = vpack.c.bf16 %v2820_v13, %v2819_v12 }
  0x9c   :  { %3019 = vmatmul.mubr.msk.bf16.vlgmr.msra.gmra.mrb[0].mxu0 %vm100_vm3, %v66_v14 }
  0x9d   :  { %3038 = vmatprep.mubr.msk.bf16.mxu0 %vm3503_vm0, %v3502_v1 }
 0x16f   :  { %v138_v18 = vpop.f32.mrb[0].mxu0 }
 0x170   :  { %v3020_v19 = vpop.f32.mrb[1].mxu0  ;;  %v3619_v21 = vadd.f32 %v138_v18, %v75_v17 }
 0x171   :  { %v141_v20 = vpop.f32.mrb[2].mxu0 }
 0x172   :  { %v3621_v22 = vadd.f32 %v141_v20, %v75_v17  ;;  %v3021_v23 = vpop.f32.mrb[3].mxu0 }
 0x174   :  { %v145_v24 = vpack.c.bf16 %v3621_v22, %v3619_v21 }
 0x176   :  { %3027 = vmatmul.mubr.msk.bf16.vlgmr.msra.gmra.mrb[0].mxu1 %vm166_vm4, %v145_v24 }
 0x177   :  { %3032 = vmatprep.mubr.msk.bf16.mxu1 %vm3503_vm0, %v3502_v1 }
 0x249   :  { %v204_v29 = vpop.f32.mrb[0].mxu1 }
 0x24a   :  { %v3028_v30 = vpop.f32.mrb[1].mxu1  ;;  %v205_v32 = vadd.f32 %v204_v29, %v153_v28 }
 0x24b   :  { %v207_v31 = vpop.f32.mrb[2].mxu1 }
 0x24c   :  { %v208_v33 = vadd.f32 %v207_v31, %v153_v28  ;;  %v3029_v34 = vpop.f32.mrb[3].mxu1  ;;  %v231_v37 = vpack.c.bf16 %v205_v32, %v205_v32 }
 0x24e   :  { %v3318_v35 = vpack.i.bf16 %v208_v33, %v205_v32  ;;  %v232_v36 = vpack.c.bf16 %v208_v33, %v208_v33 }
 0x250   :  { %3319 = vrot.lane.b32.xlu0 %v3318_v35, %s3504_s18  ;;  %3309 = vrot.lane.b32.xlu1 %v3318_v35, %s3505_s20 }
 0x254   :  { %290 = vrot.lane.b32.xlu0 %v232_v36, %s3506_s21  ;;  %3314 = vrot.lane.b32.xlu1 %v3318_v35, %s3507_s22 }
 0x258   :  { %240 = vrot.lane.b32.xlu1 %v231_v37, %s3506_s21 }
 0x2c2   :  { %v3320_v38 = vpop.permute.xlu0 %3319  ;;  %v3310_v39 = vpop.permute.xlu1 %3309 }
 0x2c3   :  { %v3312_v40 = vunpack.i.h.bf16 %v3310_v39  ;;  %v3311_v41 = vunpack.i.l.bf16 %v3310_v39  ;;  %v3322_v49 = vunpack.i.h.bf16 %v3320_v38  ;;  %v3321_v52 = vunpack.i.l.bf16 %v3320_v38 }
 0x2c5   :  { %v3644_v42 = vpack.c.bf16 %v3312_v40, %v3312_v40  ;;  %v3646_v43 = vpack.c.bf16 %v3311_v41, %v3311_v41  ;;  %v3663_v55 = vpack.c.bf16 %v3322_v49, %v3322_v49  ;;  %v3666_v56 = vpack.c.bf16 %v3321_v52, %v3321_v52 }
 0x2c6   :  { %v291_v44 = vpop.permute.xlu0 %290  ;;  %v3315_v45 = vpop.permute.xlu1 %3314 }
 0x2c7   :  { %v296_v46 = vsel %vm242_vm5, %v291_v44, 0  ;;  %v3317_v47 = vunpack.i.h.bf16 %v3315_v45  ;;  %v3316_v48 = vunpack.i.l.bf16 %v3315_v45  ;;  %388 = vrot.lane.b32.xlu0 %v3644_v42, %s3506_s21  ;;  %339 = vrot.lane.b32.xlu1 %v3646_v43, %s3506_s21 }
 0x2c8   :  { %3037 = vmatpush3.bf16.xpose.msra.mxu0 %v296_v46 }
 0x2c9   :  { %v3653_v50 = vpack.c.bf16 %v3317_v47, %v3317_v47  ;;  %v3655_v51 = vpack.c.bf16 %v3316_v48, %v3316_v48  ;;  %3048 = vmatprep.subr.bf16.mxu0 %v3502_v1 }
 0x2ca   :  { %v241_v53 = vpop.permute.xlu1 %240 }
 0x2cb   :  { %v247_v54 = vsel %vm242_vm5, %v241_v53, 0  ;;  %486 = vrot.lane.b32.xlu0 %v3653_v50, %s3506_s21  ;;  %437 = vrot.lane.b32.xlu1 %v3655_v51, %s3506_s21 }
 0x2cc   :  { %3031 = vmatpush3.bf16.xpose.msra.mxu1 %v247_v54 }
 0x2cd   :  { %3042 = vmatprep.subr.bf16.mxu1 %v3502_v1 }
 0x2cf   :  { %3039 = vmatmul.mubr.msk.bf16.vlgmr.msra.gmra.mrb[4].mxu0 %vm242_vm5, %v232_v36  ;;  %584 = vrot.lane.b32.xlu0 %v3663_v55, %s3506_s21 }
 0x2d0   :  { %535 = vrot.lane.b32.xlu1 %v3666_v56, %s3506_s21  ;;  %3050 = vmatprep.mubr.msk.bf16.mxu0 %vm3503_vm0, %v3502_v1 }
 0x2d3   :  { %736 = vrot.lane.b32.xlu0 %v231_v37, %s3499_s19  ;;  %3033 = vmatmul.mubr.msk.bf16.vlgmr.msra.gmra.mrb[4].mxu1 %vm242_vm5, %v231_v37 }
 0x2d4   :  { %785 = vrot.lane.b32.xlu1 %v232_v36, %s3499_s19  ;;  %3044 = vmatprep.mubr.msk.bf16.mxu1 %vm3503_vm0, %v3502_v1 }
 0x339   :  { %v389_v57 = vpop.permute.xlu0 %388  ;;  %v340_v58 = vpop.permute.xlu1 %339 }
 0x33a   :  { %v394_v59 = vsel %vm242_vm5, %v389_v57, 0  ;;  %v345_v60 = vsel %vm242_vm5, %v340_v58, 0 }
 0x33b   :  { %3043 = vmatpush3.bf16.xpose.msra.mxu1 %v345_v60  ;;  %3049 = vmatpush3.bf16.xpose.msra.mxu0 %v394_v59 }
 0x33c   :  { %3054 = vmatprep.subr.bf16.mxu1 %v3502_v1  ;;  %3060 = vmatprep.subr.bf16.mxu0 %v3502_v1 }
 0x33d   :  { %v487_v61 = vpop.permute.xlu0 %486  ;;  %v438_v62 = vpop.permute.xlu1 %437 }
 0x33e   :  { %v492_v63 = vsel %vm242_vm5, %v487_v61, 0  ;;  %v443_v0 = vsel %vm242_vm5, %v438_v62, 0 }
 0x341   :  { %v585_v2 = vpop.permute.xlu0 %584 }
 0x342   :  { %3045 = vmatmul.mubr.msk.bf16.vlgmr.msra.gmra.mrb[8].mxu1 %vm242_vm5, %v3646_v43  ;;  %3051 = vmatmul.mubr.msk.bf16.vlgmr.msra.gmra.mrb[8].mxu0 %vm242_vm5, %v3644_v42  ;;  %v536_v3 = vpop.permute.xlu1 %535  ;;  %v590_v4 = vsel %vm242_vm5, %v585_v2, 0 }
 0x343   :  { %3055 = vmatpush3.bf16.xpose.msra.mxu1 %v443_v0  ;;  %3061 = vmatpush3.bf16.xpose.msra.mxu0 %v492_v63  ;;  %v541_v5 = vsel %vm242_vm5, %v536_v3, 0 }
 0x344   :  { %3056 = vmatprep.mubr.msk.bf16.mxu1 %vm3503_vm0, %v3502_v1  ;;  %3062 = vmatprep.mubr.msk.bf16.mxu0 %vm3503_vm0, %v3502_v1 }
 0x345   :  { %3066 = vmatprep.subr.bf16.mxu1 %v3502_v1  ;;  %3072 = vmatprep.subr.bf16.mxu0 %v3502_v1  ;;  %v737_v6 = vpop.permute.xlu0 %736 }
 0x346   :  { %v786_v7 = vpop.permute.xlu1 %785  ;;  %v743_v8 = vsel %vm741_vm6, %v737_v6, 0 }
 0x347   :  { %v791_v9 = vsel %vm741_vm6, %v786_v7, 0 }
 0x34a   :  { %3057 = vmatmul.mubr.msk.bf16.vlgmr.msra.gmra.mrb[12].mxu1 %vm242_vm5, %v3655_v51  ;;  %3063 = vmatmul.mubr.msk.bf16.vlgmr.msra.gmra.mrb[12].mxu0 %vm242_vm5, %v3653_v50 }
 0x34b   :  { %3067 = vmatpush3.bf16.xpose.msra.mxu1 %v541_v5  ;;  %3073 = vmatpush3.bf16.xpose.msra.mxu0 %v590_v4 }
 0x34c   :  { %3068 = vmatprep.mubr.msk.bf16.mxu1 %vm3503_vm0, %v3502_v1  ;;  %3074 = vmatprep.mubr.msk.bf16.mxu0 %vm3503_vm0, %v3502_v1 }
 0x34d   :  { %3078 = vmatprep.subr.bf16.mxu1 %v3502_v1  ;;  %3084 = vmatprep.subr.bf16.mxu0 %v3502_v1 }
 0x352   :  { %3069 = vmatmul.mubr.msk.bf16.vlgmr.msra.gmra.mrb[16].mxu1 %vm242_vm5, %v3666_v56  ;;  %3075 = vmatmul.mubr.msk.bf16.vlgmr.msra.gmra.mrb[16].mxu0 %vm242_vm5, %v3663_v55 }
 0x353   :  { %3079 = vmatpush3.bf16.msra.mxu1 %v743_v8  ;;  %3085 = vmatpush3.bf16.msra.mxu0 %v791_v9 }
 0x354   :  { %3080 = vmatprep.mubr.msk.bf16.mxu1 %vm3503_vm0, %v3502_v1  ;;  %3086 = vmatprep.mubr.msk.bf16.mxu0 %vm3503_vm0, %v3502_v1 }
 0x355   :  { %3090 = vmatprep.subr.bf16.mxu1 %v3502_v1  ;;  %3096 = vmatprep.subr.bf16.mxu0 %v3502_v1 }
 0x3a2   :  { %v332_v10 = vpop.f32.mrb[4].mxu0 }
 0x3a3   :  { %v633_v11 = vmul.f32 0.35355338, %v332_v10  ;;  %v3040_v12 = vpop.f32.mrb[5].mxu0 }
 0x3a4   :  { %v335_v13 = vpop.f32.mrb[6].mxu0 }
 0x3a5   :  { %v3041_v14 = vpop.f32.mrb[7].mxu0  ;;  %v643_v15 = vsel %vm242_vm5, %v633_v11, -inf }
 0x3a6   :  { %644 = vmax.xlane.f32.xlu0 %v643_v15  ;;  %v283_v16 = vpop.f32.mrb[4].mxu1 }
 0x3a7   :  { %v632_v17 = vmul.f32 0.35355338, %v283_v16  ;;  %v3034_v18 = vpop.f32.mrb[5].mxu1 }
 0x3a8   :  { %v286_v19 = vpop.f32.mrb[6].mxu1 }
 0x3a9   :  { %v3035_v20 = vpop.f32.mrb[7].mxu1  ;;  %v640_v23 = vsel %vm242_vm5, %v632_v17, -inf }
 0x3aa   :  { %641 = vmax.xlane.f32.xlu1 %v640_v23 }
 0x415   :  { %v381_v24 = vpop.f32.mrb[8].mxu1  ;;  %v430_v28 = vpop.f32.mrb[8].mxu0 }
 0x416   :  { %v634_v29 = vmul.f32 0.35355338, %v381_v24  ;;  %v635_v30 = vmul.f32 0.35355338, %v430_v28  ;;  %v3046_v31 = vpop.f32.mrb[9].mxu1  ;;  %v3052_v32 = vpop.f32.mrb[9].mxu0 }
 0x417   :  { %v384_v33 = vpop.f32.mrb[10].mxu1  ;;  %v433_v34 = vpop.f32.mrb[10].mxu0 }
 0x418   :  { %v3047_v35 = vpop.f32.mrb[11].mxu1  ;;  %v3053_v36 = vpop.f32.mrb[11].mxu0  ;;  %v649_v37 = vsel %vm242_vm5, %v635_v30, -inf  ;;  %v646_v38 = vsel %vm242_vm5, %v634_v29, -inf }
 0x419   :  { %650 = vmax.xlane.f32.xlu1 %v649_v37  ;;  %647 = vmax.xlane.f32.xlu0 %v646_v38 }
 0x41d   :  { %v479_v39 = vpop.f32.mrb[12].mxu1  ;;  %v528_v40 = vpop.f32.mrb[12].mxu0 }
 0x41e   :  { %v3724_v41 = vmul.f32 0.35355338, %v479_v39  ;;  %v637_v44 = vmul.f32 0.35355338, %v528_v40  ;;  %v3058_v45 = vpop.f32.mrb[13].mxu1  ;;  %v3064_v46 = vpop.f32.mrb[13].mxu0 }
 0x41f   :  { %v482_v47 = vpop.f32.mrb[14].mxu1  ;;  %v531_v48 = vpop.f32.mrb[14].mxu0 }
 0x420   :  { %v3059_v49 = vpop.f32.mrb[15].mxu1  ;;  %v3065_v52 = vpop.f32.mrb[15].mxu0  ;;  %v655_v53 = vsel %vm242_vm5, %v637_v44, -inf  ;;  %v652_v54 = vsel %vm242_vm5, %v3724_v41, -inf }
 0x421   :  { %656 = vmax.xlane.f32.xlu1 %v655_v53  ;;  %653 = vmax.xlane.f32.xlu0 %v652_v54 }
 0x425   :  { %v577_v57 = vpop.f32.mrb[16].mxu1  ;;  %v626_v58 = vpop.f32.mrb[16].mxu0 }
 0x426   :  { %v3729_v59 = vmul.f32 0.35355338, %v577_v57  ;;  %v639_v60 = vmul.f32 0.35355338, %v626_v58  ;;  %v3070_v61 = vpop.f32.mrb[17].mxu1  ;;  %v3076_v62 = vpop.f32.mrb[17].mxu0 }
 0x427   :  { %v580_v63 = vpop.f32.mrb[18].mxu1  ;;  %v629_v0 = vpop.f32.mrb[18].mxu0 }
 0x428   :  { %v3071_v2 = vpop.f32.mrb[19].mxu1  ;;  %v3077_v3 = vpop.f32.mrb[19].mxu0  ;;  %v661_v4 = vsel %vm242_vm5, %v639_v60, -inf  ;;  %v658_v5 = vsel %vm242_vm5, %v3729_v59, -inf }
 0x429   :  { %662 = vmax.xlane.f32.xlu1 %v661_v4  ;;  %659 = vmax.xlane.f32.xlu0 %v658_v5 }
 0x433   :  { %v645_v6 = vpop.xlane.xlu0 %644 }
 0x434   :  { %v665_v8 = vsub.f32 %v633_v11, %v645_v6 }
 0x436   :  { %v674_v10 = vmul.f32 1.442695, %v665_v8 }
 0x437   :  { %v642_v7 = vpop.xlane.xlu1 %641 }
 0x438   :  { %v664_v9 = vsub.f32 %v632_v17, %v642_v7  ;;  %3394 = vpow2.f32 %v674_v10 }
 0x43a   :  { %833 = vrot.lane.b32.xlu1 %v3646_v43, %s3499_s19  ;;  %v672_v12 = vmul.f32 1.442695, %v664_v9 }
 0x43c   :  { %3396 = vpow2.f32 %v672_v12 }
 0x43f   :  { %881 = vrot.lane.b32.xlu0 %v3644_v42, %s3499_s19 }
 0x442   :  { %v3395_v13 = vpop.eup %3394 }
 0x443   :  { %v691_v15 = vsel %vm242_vm5, %v3395_v13, 0.0 }
 0x446   :  { %v3397_v14 = vpop.eup %3396 }
 0x447   :  { %v688_v16 = vsel %vm242_vm5, %v3397_v14, 0.0 }
 0x45e   :  { %692 = vadd.xlane.f32.xlu1 %v691_v15  ;;  %689 = vadd.xlane.f32.xlu0 %v688_v16 }
 0x46f   :  { %929 = vrot.lane.b32.xlu1 %v3655_v51, %s3499_s19 }
 0x4a6   :  { %v648_v42 = vpop.xlane.xlu0 %647  ;;  %v651_v43 = vpop.xlane.xlu1 %650 }
 0x4a7   :  { %v666_v18 = vsub.f32 %v634_v29, %v648_v42  ;;  %v667_v11 = vsub.f32 %v635_v30, %v651_v43 }
 0x4a9   :  { %v676_v17 = vmul.f32 1.442695, %v666_v18  ;;  %v678_v19 = vmul.f32 1.442695, %v667_v11 }
 0x4ab   :  { %3398 = vpow2.f32 %v676_v17 }
 0x4ac   :  { %3400 = vpow2.f32 %v678_v19 }
 0x4ae   :  { %v657_v20 = vpop.xlane.xlu1 %656  ;;  %v654_v38 = vpop.xlane.xlu0 %653 }
 0x4af   :  { %v669_v23 = vsub.f32 %v637_v44, %v657_v20  ;;  %v668_v39 = vsub.f32 %v3724_v41, %v654_v38 }
 0x4b1   :  { %v682_v24 = vmul.f32 1.442695, %v669_v23  ;;  %v680_v44 = vmul.f32 1.442695, %v668_v39 }
 0x4b3   :  { %3402 = vpow2.f32 %v682_v24 }
 0x4b5   :  { %v3742_v28 = vpop.eup %3398 }
 0x4b6   :  { %v3744_v31 = vpop.eup %3400  ;;  %v663_v32 = vpop.xlane.xlu1 %662  ;;  %v694_v51 = vsel %vm242_vm5, %v3742_v28, 0.0 }
 0x4b7   :  { %v671_v33 = vsub.f32 %v639_v60, %v663_v32  ;;  %695 = vadd.xlane.f32.xlu0 %v694_v51  ;;  %v697_v29 = vsel %vm242_vm5, %v3744_v31, 0.0  ;;  %v660_v40 = vpop.xlane.xlu0 %659 }
 0x4b8   :  { %698 = vadd.xlane.f32.xlu1 %v697_v29  ;;  %v670_v45 = vsub.f32 %v3729_v59, %v660_v40 }
 0x4b9   :  { %v686_v30 = vmul.f32 1.442695, %v671_v33 }
 0x4ba   :  { %v684_v46 = vmul.f32 1.442695, %v670_v45  ;;  %v834_v48 = vpop.permute.xlu1 %833 }
 0x4bb   :  { %3404 = vpow2.f32 %v686_v30  ;;  %v882_v47 = vpop.permute.xlu0 %881  ;;  %v839_v62 = vsel %vm741_vm6, %v834_v48, 0 }
 0x4bc   :  { %3406 = vpow2.f32 %v680_v44  ;;  %v887_v63 = vsel %vm741_vm6, %v882_v47, 0 }
 0x4bd   :  { %v3750_v34 = vpop.eup %3402  ;;  %3408 = vpow2.f32 %v684_v46 }
 0x4be   :  { %v703_v35 = vsel %vm242_vm5, %v3750_v34, 0.0 }
 0x4bf   :  { %704 = vadd.xlane.f32.xlu1 %v703_v35 }
 0x4c5   :  { %v3754_v36 = vpop.eup %3404 }
 0x4c6   :  { %v709_v37 = vsel %vm242_vm5, %v3754_v36, 0.0  ;;  %v3764_v49 = vpop.eup %3406 }
 0x4c7   :  { %710 = vadd.xlane.f32.xlu1 %v709_v37  ;;  %v3768_v41 = vpop.eup %3408 }
 0x4cd   :  { %977 = vrot.lane.b32.xlu0 %v3653_v50, %s3499_s19  ;;  %v700_v50 = vsel %vm242_vm5, %v3764_v49, 0.0 }
 0x4d8   :  { %1025 = vrot.lane.b32.xlu1 %v3666_v56, %s3499_s19  ;;  %v706_v56 = vsel %vm242_vm5, %v3768_v41, 0.0 }
 0x4eb   :  { %v690_v52 = vpop.xlane.xlu0 %689  ;;  %v693_v53 = vpop.xlane.xlu1 %692 }
 0x4ec   :  { %3410 = vrcp.f32 %v690_v52  ;;  %701 = vadd.xlane.f32.xlu0 %v700_v50 }
 0x4ed   :  { %3412 = vrcp.f32 %v693_v53 }
 0x4ef   :  { %v930_v0 = vpop.permute.xlu1 %929 }
 0x4f0   :  { %707 = vadd.xlane.f32.xlu0 %v706_v56 }
 0x4f6   :  { %v3411_v54 = vpop.eup %3410 }
 0x4f7   :  { %v3413_v57 = vpop.eup %3412  ;;  %v720_v58 = vmul.f32 %v3411_v54, %v3397_v14 }
 0x4f8   :  { %v721_v59 = vmul.f32 %v3413_v57, %v3395_v13  ;;  %v935_v13 = vsel %vm741_vm6, %v930_v0, 0 }
 0x4f9   :  { %v728_v60 = vpack.c.bf16 %v720_v58, %v720_v58 }
 0x4fa   :  { %v729_v61 = vpack.c.bf16 %v721_v59, %v721_v59  ;;  %v3374_v59 = vld [vmem:[%s4199_s4] sm:$0xff]  }
 0x4fb   :  { %3081 = vmatmul.mubr.msk.bf16.vlgmr.msra.gmra.mrb[20].mxu1 %vm242_vm5, %v728_v60 }
 0x4fc   :  { %3087 = vmatmul.mubr.msk.bf16.vlgmr.msra.gmra.mrb[20].mxu0 %vm242_vm5, %v729_v61  ;;  %3091 = vmatpush3.bf16.msra.mxu1 %v839_v62 }
 0x4fd   :  { %3097 = vmatpush3.bf16.msra.mxu0 %v887_v63  ;;  %3092 = vmatprep.mubr.msk.bf16.mxu1 %vm3503_vm0, %v3502_v1 }
 0x4fe   :  { %3098 = vmatprep.mubr.msk.bf16.mxu0 %vm3503_vm0, %v3502_v1  ;;  %3102 = vmatprep.subr.bf16.mxu1 %v3502_v1 }
 0x4ff   :  { %3108 = vmatprep.subr.bf16.mxu0 %v3502_v1 }
 0x506   :  { %1073 = vrot.lane.b32.xlu0 %v3663_v55, %s3499_s19 }
 0x544   :  { %v696_v2 = vpop.xlane.xlu0 %695 }
 0x545   :  { %3414 = vrcp.f32 %v696_v2  ;;  %v699_v3 = vpop.xlane.xlu1 %698  ;;  %v3375_v2 = vld [vmem:[%s4199_s4 + $0x8] sm:$0xff]  }
 0x546   :  { %3416 = vrcp.f32 %v699_v3 }
 0x548   :  { %v978_v9 = vpop.permute.xlu0 %977 }
 0x549   :  { %v983_v55 = vsel %vm741_vm6, %v978_v9, 0 }
 0x54c   :  { %v705_v4 = vpop.xlane.xlu1 %704 }
 0x54d   :  { %3418 = vrcp.f32 %v705_v4 }
 0x54f   :  { %v3415_v5 = vpop.eup %3414 }
 0x550   :  { %v3417_v6 = vpop.eup %3416  ;;  %v722_v7 = vmul.f32 %v3415_v5, %v3742_v28 }
 0x551   :  { %v723_v8 = vmul.f32 %v3417_v6, %v3744_v31 }
 0x552   :  { %v730_v10 = vpack.c.bf16 %v722_v7, %v722_v7 }
 0x553   :  { %v731_v12 = vpack.c.bf16 %v723_v8, %v723_v8 }
 0x554   :  { %3093 = vmatmul.mubr.msk.bf16.vlgmr.msra.gmra.mrb[24].mxu1 %vm242_vm5, %v730_v10  ;;  %v711_v42 = vpop.xlane.xlu1 %710 }
 0x555   :  { %3099 = vmatmul.mubr.msk.bf16.vlgmr.msra.gmra.mrb[24].mxu0 %vm242_vm5, %v731_v12  ;;  %3103 = vmatpush3.bf16.msra.mxu1 %v935_v13  ;;  %3420 = vrcp.f32 %v711_v42 }
 0x556   :  { %3109 = vmatpush3.bf16.msra.mxu0 %v983_v55  ;;  %3110 = vmatprep.mubr.msk.bf16.mxu0 %vm3503_vm0, %v3502_v1 }
 0x557   :  { %3120 = vmatprep.subr.bf16.mxu0 %v3502_v1  ;;  %3104 = vmatprep.mubr.msk.bf16.mxu1 %vm3503_vm0, %v3502_v1  ;;  %v3419_v14 = vpop.eup %3418 }
 0x558   :  { %3114 = vmatprep.subr.bf16.mxu1 %v3502_v1  ;;  %v725_v15 = vmul.f32 %v3419_v14, %v3750_v34  ;;  %v1026_v31 = vpop.permute.xlu1 %1025 }
 0x559   :  { %v1031_v33 = vsel %vm741_vm6, %v1026_v31, 0 }
 0x55a   :  { %v733_v16 = vpack.c.bf16 %v725_v15, %v725_v15 }
 0x55d   :  { %3111 = vmatmul.mubr.msk.bf16.vlgmr.msra.gmra.mrb[28].mxu0 %vm242_vm5, %v733_v16 }
 0x55e   :  { %3122 = vmatprep.mubr.msk.bf16.mxu0 %vm3503_vm0, %v3502_v1 }
 0x55f   :  { %v3421_v18 = vpop.eup %3420 }
 0x560   :  { %v727_v17 = vmul.f32 %v3421_v18, %v3754_v36 }
 0x562   :  { %v735_v24 = vpack.c.bf16 %v727_v17, %v727_v17 }
 0x579   :  { %v702_v43 = vpop.xlane.xlu0 %701 }
 0x57a   :  { %3422 = vrcp.f32 %v702_v43 }
 0x57d   :  { %v708_v11 = vpop.xlane.xlu0 %707 }
 0x57e   :  { %3424 = vrcp.f32 %v708_v11 }
 0x581   :  { %v1074_v19 = vpop.permute.xlu0 %1073 }
 0x582   :  { %v1079_v20 = vsel %vm741_vm6, %v1074_v19, 0 }
 0x583   :  { %3121 = vmatpush3.bf16.msra.mxu0 %v1079_v20 }
 0x584   :  { %v3423_v23 = vpop.eup %3422  ;;  %3134 = vmatprep.subr.bf16.mxu0 %v3502_v1 }
 0x585   :  { %v724_v28 = vmul.f32 %v3423_v23, %v3764_v49 }
 0x586   :  { %3123 = vmatmul.mubr.msk.bf16.vlgmr.msra.gmra.mrb[32].mxu0 %vm242_vm5, %v735_v24 }
 0x587   :  { %v732_v32 = vpack.c.bf16 %v724_v28, %v724_v28  ;;  %3138 = vmatprep.mubr.msk.bf16.mxu0 %vm3503_vm0, %v3502_v1 }
 0x588   :  { %v3425_v51 = vpop.eup %3424 }
 0x589   :  { %3105 = vmatmul.mubr.msk.bf16.vlgmr.msra.gmra.mrb[28].mxu1 %vm242_vm5, %v732_v32  ;;  %v726_v29 = vmul.f32 %v3425_v51, %v3768_v41  ;;  %v1160_v32 = vsub.s32 1, %v3628_v25 }
 0x58a   :  { %3115 = vmatpush3.bf16.msra.mxu1 %v1031_v33  ;;  %3116 = vmatprep.mubr.msk.bf16.mxu1 %vm3503_vm0, %v3502_v1 }
 0x58b   :  { %3126 = vmatprep.subr.bf16.mxu1 %v3502_v1  ;;  %v734_v30 = vpack.c.bf16 %v726_v29, %v726_v29  ;;  %v1161_v51 = vrot.slane %v3634_v27, %v1160_v32 }
 0x591   :  { %3117 = vmatmul.mubr.msk.bf16.vlgmr.msra.gmra.mrb[32].mxu1 %vm242_vm5, %v734_v30 }
 0x592   :  { %3130 = vmatprep.mubr.msk.bf16.mxu1 %vm3503_vm0, %v3502_v1  ;;  %3127 = vmatpush3.bf16.msra.mxu1 %v3374_v59 }
 0x593   :  { %3128 = vmatprep.subr.bf16.mxu1 %v3502_v1 }
 0x596   :  { %3129 = vmatpush3.bf16.msra.mxu1 %v3375_v2 }
 0x597   :  { %3142 = vmatprep.subr.bf16.mxu1 %v3502_v1 }
 0x5ce   :  { %v779_v34 = vpop.f32.mrb[20].mxu1 }
 0x5cf   :  { %v827_v35 = vpop.f32.mrb[20].mxu0  ;;  %v3082_v36 = vpop.f32.mrb[21].mxu1 }
 0x5d0   :  { %v3088_v37 = vpop.f32.mrb[21].mxu0  ;;  %v782_v38 = vpop.f32.mrb[22].mxu1 }
 0x5d1   :  { %v830_v39 = vpop.f32.mrb[22].mxu0  ;;  %v3083_v40 = vpop.f32.mrb[23].mxu1 }
 0x5d2   :  { %v3089_v44 = vpop.f32.mrb[23].mxu0 }
 0x627   :  { %v875_v45 = vpop.f32.mrb[24].mxu1 }
 0x628   :  { %v923_v46 = vpop.f32.mrb[24].mxu0  ;;  %v3094_v47 = vpop.f32.mrb[25].mxu1 }
 0x629   :  { %v3323_v48 = vpack.i.bf16 %v923_v46, %v875_v45  ;;  %v3100_v49 = vpop.f32.mrb[25].mxu0  ;;  %v878_v52 = vpop.f32.mrb[26].mxu1 }
 0x62a   :  { %v926_v53 = vpop.f32.mrb[26].mxu0  ;;  %v3095_v50 = vpop.f32.mrb[27].mxu1 }
 0x62b   :  { %3324 = vrot.lane.b32.xlu1 %v3323_v48, %s3508_s23  ;;  %v3101_v41 = vpop.f32.mrb[27].mxu0 }
 0x62c   :  { %v3377_v41 = vld [vmem:[%s4200_s5 + $0x8] sm:$0xff]  }
 0x630   :  { %v1019_v56 = vpop.f32.mrb[28].mxu0 }
 0x631   :  { %v3112_v54 = vpop.f32.mrb[29].mxu0 }
 0x632   :  { %v1022_v57 = vpop.f32.mrb[30].mxu0  ;;  %v3379_v54 = vld [vmem:[%s4201_s6 + $0x8] sm:$0xff]  }
 0x633   :  { %v3113_v58 = vpop.f32.mrb[31].mxu0 }
 0x659   :  { %v1115_v60 = vpop.f32.mrb[32].mxu0 }
 0x65a   :  { %v3124_v61 = vpop.f32.mrb[33].mxu0 }
 0x65b   :  { %v1118_v62 = vpop.f32.mrb[34].mxu0 }
 0x65c   :  { %v971_v63 = vpop.f32.mrb[28].mxu1  ;;  %v3125_v0 = vpop.f32.mrb[35].mxu0 }
 0x65d   :  { %v3328_v3 = vpack.i.bf16 %v1019_v56, %v971_v63  ;;  %v3106_v4 = vpop.f32.mrb[29].mxu1  ;;  %v3378_v56 = vld [vmem:[%s4201_s6] sm:$0xff]   ;;  %v1249_v63 = vsub.s32 4, %v3628_v25 }
 0x65e   :  { %v974_v5 = vpop.f32.mrb[30].mxu1  ;;  %v1255_v4 = vsub.s32 5, %v3628_v25 }
 0x65f   :  { %v3107_v6 = vpop.f32.mrb[31].mxu1  ;;  %3329 = vrot.lane.b32.xlu0 %v3328_v3, %s3509_s7  ;;  %v1250_v2 = vrot.slane %v3634_v27, %v1249_v63 }
 0x664   :  { %v1067_v7 = vpop.f32.mrb[32].mxu1 }
 0x665   :  { %v3333_v8 = vpack.i.bf16 %v1115_v60, %v1067_v7  ;;  %v3118_v9 = vpop.f32.mrb[33].mxu1 }
 0x666   :  { %v1070_v10 = vpop.f32.mrb[34].mxu1 }
 0x667   :  { %3334 = vrot.lane.b32.xlu1 %v3333_v8, %s3510_s28  ;;  %v3119_v12 = vpop.f32.mrb[35].mxu1  ;;  %v1256_v8 = vrot.slane %v3634_v27, %v1255_v4 }
 0x69d   :  { %v3325_v13 = vpop.permute.xlu1 %3324 }
 0x69e   :  { %v3327_v14 = vunpack.i.h.bf16 %v3325_v13  ;;  %v3326_v15 = vunpack.i.l.bf16 %v3325_v13 }
 0x6a0   :  { %v1146_v18 = vsel %vm242_vm5, %v827_v35, %v3327_v14  ;;  %v1145_v11 = vsel %vm242_vm5, %v779_v34, %v3326_v15  ;;  %v3381_v14 = vld [vmem:[%s4201_s6 + $0x18] sm:$0xff]   ;;  %v1266_v15 = vsub.s32 2, %v3628_v25 }
 0x6d1   :  { %v3330_v55 = vpop.permute.xlu0 %3329 }
 0x6d2   :  { %v3332_v16 = vunpack.i.h.bf16 %v3330_v55  ;;  %v3331_v42 = vunpack.i.l.bf16 %v3330_v55  ;;  %v3380_v55 = vld [vmem:[%s4201_s6 + $0x10] sm:$0xff]  }
 0x6d4   :  { %v1148_v20 = vsel %vm1147_vm7, %v1145_v11, %v3331_v42  ;;  %v1149_v23 = vsel %vm1147_vm7, %v1146_v18, %v3332_v16  ;;  %v1267_v16 = vrot.slane %v3634_v27, %v1266_v15 }
 0x6d9   :  { %v3335_v43 = vpop.permute.xlu1 %3334 }
 0x6da   :  { %v3337_v17 = vunpack.i.h.bf16 %v3335_v43  ;;  %v3336_v19 = vunpack.i.l.bf16 %v3335_v43 }
 0x6dc   :  { %v1151_v24 = vsel %vm1150_vm8, %v1148_v20, %v3336_v19  ;;  %v1152_v28 = vsel %vm1150_vm8, %v1149_v23, %v3337_v17 }
 0x6dd   :  { %v1153_v31 = vpack.c.bf16 %v1152_v28, %v1151_v24  ;;  %v1337_v28 = vsub.s32 3, %v3628_v25 }
 0x6df   :  { %3131 = vmatmul.mubr.msk.bf16.vlgmr.msra.gmra.mrb[36].mxu1 %vm166_vm4, %v1153_v31  ;;  %v1338_v31 = vrot.slane %v3634_v27, %v1337_v28 }
 0x6e0   :  { %3150 = vmatprep.mubr.msk.bf16.mxu1 %vm3503_vm0, %v3502_v1  ;;  %3143 = vmatpush3.bf16.msra.mxu1 %v3378_v56 }
 0x6e1   :  { %3144 = vmatprep.subr.bf16.mxu1 %v3502_v1 }
 0x6e4   :  { %3145 = vmatpush3.bf16.msra.mxu1 %v3379_v54 }
 0x6e5   :  { %3146 = vmatprep.subr.bf16.mxu1 %v3502_v1 }
 0x6e8   :  { %3147 = vmatpush3.bf16.msra.mxu1 %v3380_v55 }
 0x6e9   :  { %3148 = vmatprep.subr.bf16.mxu1 %v3502_v1 }
 0x6ec   :  { %3149 = vmatpush3.bf16.msra.mxu1 %v3381_v14 }
 0x6ed   :  { %3168 = vmatprep.subr.bf16.mxu1 %v3502_v1 }
 0x7b2   :  { %v1211_v33 = vpop.f32.mrb[36].mxu1 }
 0x7b3   :  { %v1212_v29 = vadd.f32 %v1211_v33, %v1161_v51  ;;  %v3132_v30 = vpop.f32.mrb[37].mxu1 }
 0x7b4   :  { %v1214_v34 = vpop.f32.mrb[38].mxu1 }
 0x7b5   :  { %v1215_v35 = vadd.f32 %v1214_v34, %v1161_v51  ;;  %v3133_v36 = vpop.f32.mrb[39].mxu1  ;;  %v1218_v37 = vadd.f32 %v1212_v29, %v3619_v21 }
 0x7b7   :  { %v1220_v38 = vsel %vm166_vm4, %v1218_v37, 0.0  ;;  %v1219_v39 = vadd.f32 %v1215_v35, %v3621_v22  ;;  %v3376_v22 = vld [vmem:[%s4200_s5] sm:$0xff]  }
 0x7b8   :  { %1221 = vadd.xlane.f32.xlu0 %v1220_v38  ;;  %3135 = vmatpush3.bf16.msra.mxu0 %v3376_v22  ;;  %v3383_v22 = vld [vmem:[%s4198_s3 + $0x18] sm:$0xff]  }
 0x7b9   :  { %v1223_v40 = vsel %vm166_vm4, %v1219_v39, 0.0  ;;  %3136 = vmatprep.subr.bf16.mxu0 %v3502_v1 }
 0x7ba   :  { %1224 = vadd.xlane.f32.xlu1 %v1223_v40 }
 0x7bc   :  { %3137 = vmatpush3.bf16.msra.mxu0 %v3377_v41 }
 0x7bd   :  { %3154 = vmatprep.subr.bf16.mxu0 %v3502_v1 }
 0x845   :  { %v1222_v44 = vpop.xlane.xlu0 %1221 }
 0x846   :  { %v1227_v45 = vmul.f32 0.03125, %v1222_v44 }
 0x847   :  { %v1225_v46 = vpop.xlane.xlu1 %1224 }
 0x848   :  { %v1229_v47 = vsub.f32 %v1218_v37, %v1227_v45  ;;  %v1228_v48 = vmul.f32 0.03125, %v1225_v46 }
 0x84a   :  { %v1230_v49 = vsub.f32 %v1219_v39, %v1228_v48  ;;  %v1231_v52 = vmul.f32 %v1229_v47, %v1229_v47 }
 0x84c   :  { %v1233_v53 = vsel %vm166_vm4, %v1231_v52, 0.0  ;;  %v1232_v50 = vmul.f32 %v1230_v49, %v1230_v49 }
 0x84d   :  { %1234 = vadd.xlane.f32.xlu0 %v1233_v53 }
 0x84e   :  { %v1236_v21 = vsel %vm166_vm4, %v1232_v50, 0.0 }
 0x851   :  { %1237 = vadd.xlane.f32.xlu0 %v1236_v21  ;;  %v3382_v21 = vld [vmem:[%s4198_s3 + $0x10] sm:$0xff]  }
 0x8da   :  { %v1235_v57 = vpop.xlane.xlu0 %1234 }
 0x8db   :  { %v1239_v58 = vmul.f32 0.03125, %v1235_v57 }
 0x8dd   :  { %v1241_v59 = vadd.f32 1e-05, %v1239_v58 }
 0x8de   :  { %v1238_v60 = vpop.xlane.xlu0 %1237 }
 0x8df   :  { %3426 = vrsqrt.f32 %v1241_v59  ;;  %v1240_v61 = vmul.f32 0.03125, %v1238_v60  ;;  %v1437_v60 = vsub.s32 6, %v3628_v25 }
 0x8e1   :  { %v1242_v62 = vadd.f32 1e-05, %v1240_v61  ;;  %v1438_v61 = vrot.slane %v3634_v27, %v1437_v60 }
 0x8e3   :  { %3428 = vrsqrt.f32 %v1242_v62  ;;  %v1443_v62 = vsub.s32 7, %v3628_v25 }
 0x8e9   :  { %v3427_v0 = vpop.eup %3426 }
 0x8ea   :  { %v1245_v3 = vmul.f32 %v3427_v0, %v1229_v47 }
 0x8ec   :  { %v1251_v6 = vmul.f32 %v1250_v2, %v1245_v3 }
 0x8ed   :  { %v3429_v5 = vpop.eup %3428 }
 0x8ee   :  { %v1246_v7 = vmul.f32 %v3429_v5, %v1230_v49  ;;  %v1257_v10 = vadd.f32 %v1256_v8, %v1251_v6 }
 0x8f0   :  { %v1252_v9 = vmul.f32 %v1250_v2, %v1246_v7  ;;  %v1444_v7 = vrot.slane %v3634_v27, %v1443_v62 }
 0x8f2   :  { %v1258_v12 = vadd.f32 %v1256_v8, %v1252_v9 }
 0x8f4   :  { %v1259_v13 = vpack.c.bf16 %v1258_v12, %v1257_v10 }
 0x8f6   :  { %3139 = vmatmul.mubr.msk.bf16.vlgmr.msra.gmra.mrb[36].mxu0 %vm166_vm4, %v1259_v13  ;;  %v3924_v13 = vld [vmem:[%s4203_s8 + $0x8] sm:$0xff] }
 0x8f7   :  { %3158 = vmatprep.mubr.msk.bf16.mxu0 %vm3503_vm0, %v3502_v1  ;;  %3155 = vmatpush3.bf16.msra.mxu0 %v3382_v21  ;;  %v1456_v27 = vrot.slane %v3924_v13, %v152_v26 }
 0x8f8   :  { %3156 = vmatprep.subr.bf16.mxu0 %v3502_v1 }
 0x8fb   :  { %3157 = vmatpush3.bf16.msra.mxu0 %v3383_v22 }
 0x8fc   :  { %3162 = vmatprep.subr.bf16.mxu0 %v3502_v1 }
 0x9c9   :  { %v1317_v42 = vpop.f32.mrb[36].mxu0 }
 0x9ca   :  { %v1318_v43 = vadd.f32 %v1317_v42, %v1267_v16  ;;  %v3140_v18 = vpop.f32.mrb[37].mxu0 }
 0x9cb   :  { %v1320_v11 = vpop.f32.mrb[38].mxu0 }
 0x9cc   :  { %v1321_v17 = vadd.f32 %v1320_v11, %v1267_v16  ;;  %v3141_v19 = vpop.f32.mrb[39].mxu0  ;;  %v1324_v20 = vmax.f32 %v1318_v43, 0.0 }
 0x9ce   :  { %v1325_v23 = vmax.f32 %v1321_v17, 0.0 }
 0x9d0   :  { %v1326_v24 = vpack.c.bf16 %v1325_v23, %v1324_v20 }
 0x9d2   :  { %3151 = vmatmul.mubr.msk.bf16.vlgmr.msra.gmra.mrb[40].mxu1 %vm100_vm3, %v1326_v24 }
 0x9d3   :  { %3170 = vmatprep.mubr.msk.bf16.mxu1 %vm3503_vm0, %v3502_v1 }
 0xaa5   :  { %v1400_v51 = vpop.f32.mrb[40].mxu1 }
 0xaa6   :  { %v1401_v33 = vadd.f32 %v1400_v51, %v1338_v31  ;;  %v3152_v29 = vpop.f32.mrb[41].mxu1 }
 0xaa7   :  { %v1403_v30 = vpop.f32.mrb[42].mxu1 }
 0xaa8   :  { %v1404_v34 = vadd.f32 %v1403_v30, %v1338_v31  ;;  %v3153_v35 = vpop.f32.mrb[43].mxu1  ;;  %v1407_v36 = vadd.f32 %v1401_v33, %v1257_v10 }
 0xaaa   :  { %v1409_v37 = vsel %vm166_vm4, %v1407_v36, 0.0  ;;  %v1408_v38 = vadd.f32 %v1404_v34, %v1258_v12 }
 0xaab   :  { %1410 = vadd.xlane.f32.xlu1 %v1409_v37 }
 0xaac   :  { %v1412_v39 = vsel %vm166_vm4, %v1408_v38, 0.0 }
 0xaad   :  { %1413 = vadd.xlane.f32.xlu0 %v1412_v39 }
 0xb38   :  { %v1411_v40 = vpop.xlane.xlu1 %1410 }
 0xb39   :  { %v1415_v44 = vmul.f32 0.03125, %v1411_v40 }
 0xb3a   :  { %v1414_v45 = vpop.xlane.xlu0 %1413 }
 0xb3b   :  { %v1417_v46 = vsub.f32 %v1407_v36, %v1415_v44  ;;  %v1416_v47 = vmul.f32 0.03125, %v1414_v45 }
 0xb3d   :  { %v1418_v48 = vsub.f32 %v1408_v38, %v1416_v47  ;;  %v1419_v49 = vmul.f32 %v1417_v46, %v1417_v46 }
 0xb3f   :  { %v1421_v52 = vsel %vm166_vm4, %v1419_v49, 0.0  ;;  %v1420_v53 = vmul.f32 %v1418_v48, %v1418_v48 }
 0xb40   :  { %1422 = vadd.xlane.f32.xlu1 %v1421_v52 }
 0xb41   :  { %v1424_v50 = vsel %vm166_vm4, %v1420_v53, 0.0 }
 0xb42   :  { %1425 = vadd.xlane.f32.xlu0 %v1424_v50 }
 0xbcd   :  { %v1423_v41 = vpop.xlane.xlu1 %1422 }
 0xbce   :  { %v1427_v56 = vmul.f32 0.03125, %v1423_v41 }
 0xbcf   :  { %v1426_v54 = vpop.xlane.xlu0 %1425 }
 0xbd0   :  { %v1429_v57 = vadd.f32 1e-05, %v1427_v56  ;;  %v1428_v58 = vmul.f32 0.03125, %v1426_v54 }
 0xbd2   :  { %3430 = vrsqrt.f32 %v1429_v57  ;;  %v1430_v59 = vadd.f32 1e-05, %v1428_v58 }
 0xbd4   :  { %3432 = vrsqrt.f32 %v1430_v59 }
 0xbdc   :  { %v3431_v0 = vpop.eup %3430 }
 0xbdd   :  { %v1433_v2 = vmul.f32 %v3431_v0, %v1417_v46 }
 0xbde   :  { %v3433_v3 = vpop.eup %3432 }
 0xbdf   :  { %v1439_v5 = vmul.f32 %v1438_v61, %v1433_v2  ;;  %v1434_v6 = vmul.f32 %v3433_v3, %v1418_v48 }
 0xbe1   :  { %v1440_v8 = vmul.f32 %v1438_v61, %v1434_v6  ;;  %v3912_v9 = vadd.f32 %v1444_v7, %v1439_v5 }
 0xbe3   :  { %v3914_v10 = vadd.f32 %v1444_v7, %v1440_v8 }
 0xbe5   :  { %v1447_v12 = vpack.c.bf16 %v3914_v10, %v3912_v9 }
 0xbe7   :  { %3159 = vmatmul.mubr.msk.bf16.vlgmr.msra.gmra.mrb[40].mxu0 %vm166_vm4, %v1447_v12 }
 0xbe8   :  { %3164 = vmatprep.mubr.msk.bf16.mxu0 %vm3503_vm0, %v3502_v1 }
 0xcba   :  { %v1506_v55 = vpop.f32.mrb[40].mxu0 }
 0xcbb   :  { %v3160_v14 = vpop.f32.mrb[41].mxu0  ;;  %v1507_v42 = vadd.f32 %v1506_v55, %v1456_v27 }
 0xcbc   :  { %v1509_v16 = vpop.f32.mrb[42].mxu0 }
 0xcbd   :  { %v1510_v43 = vadd.f32 %v1509_v16, %v1456_v27  ;;  %v3161_v18 = vpop.f32.mrb[43].mxu0  ;;  %v1533_v19 = vpack.c.bf16 %v1507_v42, %v1507_v42 }
 0xcbf   :  { %v3343_v11 = vpack.i.bf16 %v1510_v43, %v1507_v42  ;;  %v1534_v17 = vpack.c.bf16 %v1510_v43, %v1510_v43 }
 0xcc1   :  { %3344 = vrot.lane.b32.xlu0 %v3343_v11, %s3507_s22  ;;  %3339 = vrot.lane.b32.xlu1 %v3343_v11, %s3505_s20 }
 0xcc5   :  { %3349 = vrot.lane.b32.xlu1 %v3343_v11, %s3504_s18  ;;  %1591 = vrot.lane.b32.xlu0 %v1534_v17, %s3506_s21 }
 0xcc9   :  { %1542 = vrot.lane.b32.xlu1 %v1533_v19, %s3506_s21 }
 0xd33   :  { %v3345_v26 = vpop.permute.xlu0 %3344  ;;  %v3340_v20 = vpop.permute.xlu1 %3339 }
 0xd34   :  { %v3342_v23 = vunpack.i.h.bf16 %v3340_v20  ;;  %v3341_v24 = vunpack.i.l.bf16 %v3340_v20  ;;  %v3347_v31 = vunpack.i.h.bf16 %v3345_v26  ;;  %v3346_v51 = vunpack.i.l.bf16 %v3345_v26 }
 0xd36   :  { %v3934_v33 = vpack.c.bf16 %v3342_v23, %v3342_v23  ;;  %v3936_v29 = vpack.c.bf16 %v3341_v24, %v3341_v24  ;;  %v3943_v36 = vpack.c.bf16 %v3347_v31, %v3347_v31  ;;  %v3945_v37 = vpack.c.bf16 %v3346_v51, %v3346_v51 }
 0xd37   :  { %v3350_v30 = vpop.permute.xlu1 %3349  ;;  %v1592_v34 = vpop.permute.xlu0 %1591 }
 0xd38   :  { %v1597_v35 = vsel %vm242_vm5, %v1592_v34, 0  ;;  %1640 = vrot.lane.b32.xlu1 %v3936_v29, %s3506_s21  ;;  %1689 = vrot.lane.b32.xlu0 %v3934_v33, %s3506_s21  ;;  %v3352_v38 = vunpack.i.h.bf16 %v3350_v30  ;;  %v3351_v39 = vunpack.i.l.bf16 %v3350_v30 }
 0xd39   :  { %3169 = vmatpush3.bf16.xpose.msra.mxu1 %v1597_v35 }
 0xd3a   :  { %3180 = vmatprep.subr.bf16.mxu1 %v3502_v1  ;;  %v3953_v45 = vpack.c.bf16 %v3352_v38, %v3352_v38  ;;  %v3955_v46 = vpack.c.bf16 %v3351_v39, %v3351_v39 }
 0xd3b   :  { %v1543_v40 = vpop.permute.xlu1 %1542 }
 0xd3c   :  { %v1548_v44 = vsel %vm242_vm5, %v1543_v40, 0  ;;  %1738 = vrot.lane.b32.xlu1 %v3945_v37, %s3506_s21  ;;  %1787 = vrot.lane.b32.xlu0 %v3943_v36, %s3506_s21 }
 0xd3d   :  { %3163 = vmatpush3.bf16.xpose.msra.mxu0 %v1548_v44 }
 0xd3e   :  { %3174 = vmatprep.subr.bf16.mxu0 %v3502_v1 }
 0xd40   :  { %1836 = vrot.lane.b32.xlu1 %v3955_v46, %s3506_s21  ;;  %1885 = vrot.lane.b32.xlu0 %v3953_v45, %s3506_s21 }
 0xd41   :  { %3171 = vmatmul.mubr.msk.bf16.vlgmr.msra.gmra.mrb[44].mxu1 %vm242_vm5, %v1534_v17 }
 0xd42   :  { %3182 = vmatprep.mubr.msk.bf16.mxu1 %vm3503_vm0, %v3502_v1 }
 0xd44   :  { %3165 = vmatmul.mubr.msk.bf16.vlgmr.msra.gmra.mrb[44].mxu0 %vm242_vm5, %v1533_v19  ;;  %2085 = vrot.lane.b32.xlu1 %v1534_v17, %s3499_s19 }
 0xd45   :  { %2037 = vrot.lane.b32.xlu0 %v1533_v19, %s3499_s19  ;;  %3176 = vmatprep.mubr.msk.bf16.mxu0 %vm3503_vm0, %v3502_v1 }
 0xdaa   :  { %v1641_v47 = vpop.permute.xlu1 %1640  ;;  %v1690_v48 = vpop.permute.xlu0 %1689 }
 0xdab   :  { %v1646_v49 = vsel %vm242_vm5, %v1641_v47, 0  ;;  %v1695_v52 = vsel %vm242_vm5, %v1690_v48, 0 }
 0xdac   :  { %3175 = vmatpush3.bf16.xpose.msra.mxu0 %v1646_v49  ;;  %3181 = vmatpush3.bf16.xpose.msra.mxu1 %v1695_v52 }
 0xdad   :  { %3186 = vmatprep.subr.bf16.mxu0 %v3502_v1  ;;  %3192 = vmatprep.subr.bf16.mxu1 %v3502_v1 }
 0xdae   :  { %v1739_v53 = vpop.permute.xlu1 %1738  ;;  %v1788_v50 = vpop.permute.xlu0 %1787 }
 0xdaf   :  { %v1744_v21 = vsel %vm242_vm5, %v1739_v53, 0  ;;  %v1793_v22 = vsel %vm242_vm5, %v1788_v50, 0 }
 0xdb2   :  { %v1837_v41 = vpop.permute.xlu1 %1836  ;;  %v1886_v56 = vpop.permute.xlu0 %1885 }
 0xdb3   :  { %3177 = vmatmul.mubr.msk.bf16.vlgmr.msra.gmra.mrb[48].mxu0 %vm242_vm5, %v3936_v29  ;;  %3183 = vmatmul.mubr.msk.bf16.vlgmr.msra.gmra.mrb[48].mxu1 %vm242_vm5, %v3934_v33  ;;  %v1842_v54 = vsel %vm242_vm5, %v1837_v41, 0  ;;  %v1891_v57 = vsel %vm242_vm5, %v1886_v56, 0 }
 0xdb4   :  { %3187 = vmatpush3.bf16.xpose.msra.mxu0 %v1744_v21  ;;  %3193 = vmatpush3.bf16.xpose.msra.mxu1 %v1793_v22 }
 0xdb5   :  { %3188 = vmatprep.mubr.msk.bf16.mxu0 %vm3503_vm0, %v3502_v1  ;;  %3194 = vmatprep.mubr.msk.bf16.mxu1 %vm3503_vm0, %v3502_v1 }
 0xdb6   :  { %3198 = vmatprep.subr.bf16.mxu0 %v3502_v1  ;;  %3204 = vmatprep.subr.bf16.mxu1 %v3502_v1  ;;  %v2086_v58 = vpop.permute.xlu1 %2085 }
 0xdb7   :  { %v2038_v59 = vpop.permute.xlu0 %2037  ;;  %v2091_v61 = vsel %vm741_vm6, %v2086_v58, 0 }
 0xdb8   :  { %v2043_v0 = vsel %vm741_vm6, %v2038_v59, 0 }
 0xdbb   :  { %3189 = vmatmul.mubr.msk.bf16.vlgmr.msra.gmra.mrb[52].mxu0 %vm242_vm5, %v3945_v37  ;;  %3195 = vmatmul.mubr.msk.bf16.vlgmr.msra.gmra.mrb[52].mxu1 %vm242_vm5, %v3943_v36 }
 0xdbc   :  { %3199 = vmatpush3.bf16.xpose.msra.mxu0 %v1842_v54  ;;  %3205 = vmatpush3.bf16.xpose.msra.mxu1 %v1891_v57 }
 0xdbd   :  { %3200 = vmatprep.mubr.msk.bf16.mxu0 %vm3503_vm0, %v3502_v1  ;;  %3206 = vmatprep.mubr.msk.bf16.mxu1 %vm3503_vm0, %v3502_v1 }
 0xdbe   :  { %3210 = vmatprep.subr.bf16.mxu0 %v3502_v1  ;;  %3216 = vmatprep.subr.bf16.mxu1 %v3502_v1 }
 0xdc3   :  { %3201 = vmatmul.mubr.msk.bf16.vlgmr.msra.gmra.mrb[56].mxu0 %vm242_vm5, %v3955_v46  ;;  %3207 = vmatmul.mubr.msk.bf16.vlgmr.msra.gmra.mrb[56].mxu1 %vm242_vm5, %v3953_v45 }
 0xdc4   :  { %3211 = vmatpush3.bf16.msra.mxu0 %v2043_v0  ;;  %3217 = vmatpush3.bf16.msra.mxu1 %v2091_v61 }
 0xdc5   :  { %3212 = vmatprep.mubr.msk.bf16.mxu0 %vm3503_vm0, %v3502_v1  ;;  %3218 = vmatprep.mubr.msk.bf16.mxu1 %vm3503_vm0, %v3502_v1 }
 0xdc6   :  { %3222 = vmatprep.subr.bf16.mxu0 %v3502_v1  ;;  %3228 = vmatprep.subr.bf16.mxu1 %v3502_v1 }
 0xe14   :  { %v1633_v2 = vpop.f32.mrb[44].mxu1 }
 0xe15   :  { %v1934_v3 = vmul.f32 0.35355338, %v1633_v2  ;;  %v3172_v5 = vpop.f32.mrb[45].mxu1 }
 0xe16   :  { %v1636_v6 = vpop.f32.mrb[46].mxu1 }
 0xe17   :  { %v3173_v7 = vpop.f32.mrb[47].mxu1  ;;  %v1584_v8 = vpop.f32.mrb[44].mxu0  ;;  %v1944_v12 = vsel %vm242_vm5, %v1934_v3, -inf }
 0xe18   :  { %v1933_v27 = vmul.f32 0.35355338, %v1584_v8  ;;  %1945 = vmax.xlane.f32.xlu0 %v1944_v12  ;;  %v3166_v55 = vpop.f32.mrb[45].mxu0 }
 0xe19   :  { %v1587_v14 = vpop.f32.mrb[46].mxu0 }
 0xe1a   :  { %v3167_v16 = vpop.f32.mrb[47].mxu0  ;;  %v1941_v42 = vsel %vm242_vm5, %v1933_v27, -inf }
 0xe1b   :  { %1942 = vmax.xlane.f32.xlu1 %v1941_v42 }
 0xe86   :  { %v1682_v43 = vpop.f32.mrb[48].mxu0  ;;  %v1731_v18 = vpop.f32.mrb[48].mxu1 }
 0xe87   :  { %v1935_v11 = vmul.f32 0.35355338, %v1682_v43  ;;  %v1936_v17 = vmul.f32 0.35355338, %v1731_v18  ;;  %v3178_v19 = vpop.f32.mrb[49].mxu0  ;;  %v3184_v26 = vpop.f32.mrb[49].mxu1 }
 0xe88   :  { %v1685_v20 = vpop.f32.mrb[50].mxu0  ;;  %v1734_v23 = vpop.f32.mrb[50].mxu1 }
 0xe89   :  { %v3179_v24 = vpop.f32.mrb[51].mxu0  ;;  %v3185_v31 = vpop.f32.mrb[51].mxu1  ;;  %v1947_v51 = vsel %vm242_vm5, %v1935_v11, -inf  ;;  %v1950_v30 = vsel %vm242_vm5, %v1936_v17, -inf }
 0xe8a   :  { %1948 = vmax.xlane.f32.xlu0 %v1947_v51  ;;  %1951 = vmax.xlane.f32.xlu1 %v1950_v30 }
 0xe8e   :  { %v1780_v34 = vpop.f32.mrb[52].mxu0  ;;  %v1829_v35 = vpop.f32.mrb[52].mxu1 }
 0xe8f   :  { %v4014_v38 = vmul.f32 0.35355338, %v1780_v34  ;;  %v1938_v39 = vmul.f32 0.35355338, %v1829_v35  ;;  %v3190_v40 = vpop.f32.mrb[53].mxu0  ;;  %v3196_v44 = vpop.f32.mrb[53].mxu1 }
 0xe90   :  { %v1783_v47 = vpop.f32.mrb[54].mxu0  ;;  %v1832_v48 = vpop.f32.mrb[54].mxu1 }
 0xe91   :  { %v3191_v49 = vpop.f32.mrb[55].mxu0  ;;  %v3197_v52 = vpop.f32.mrb[55].mxu1  ;;  %v1953_v53 = vsel %vm242_vm5, %v4014_v38, -inf  ;;  %v1956_v50 = vsel %vm242_vm5, %v1938_v39, -inf }
 0xe92   :  { %1954 = vmax.xlane.f32.xlu0 %v1953_v53  ;;  %1957 = vmax.xlane.f32.xlu1 %v1956_v50 }
 0xe96   :  { %v1878_v21 = vpop.f32.mrb[56].mxu0  ;;  %v1927_v22 = vpop.f32.mrb[56].mxu1 }
 0xe97   :  { %v4019_v41 = vmul.f32 0.35355338, %v1878_v21  ;;  %v1940_v56 = vmul.f32 0.35355338, %v1927_v22  ;;  %v3202_v54 = vpop.f32.mrb[57].mxu0  ;;  %v3208_v57 = vpop.f32.mrb[57].mxu1 }
 0xe98   :  { %v1881_v58 = vpop.f32.mrb[58].mxu0  ;;  %v1930_v59 = vpop.f32.mrb[58].mxu1 }
 0xe99   :  { %v3203_v61 = vpop.f32.mrb[59].mxu0  ;;  %v3209_v0 = vpop.f32.mrb[59].mxu1  ;;  %v1959_v2 = vsel %vm242_vm5, %v4019_v41, -inf  ;;  %v1962_v5 = vsel %vm242_vm5, %v1940_v56, -inf }
 0xe9a   :  { %1960 = vmax.xlane.f32.xlu0 %v1959_v2  ;;  %1963 = vmax.xlane.f32.xlu1 %v1962_v5 }
 0xea5   :  { %v1946_v6 = vpop.xlane.xlu0 %1945 }
 0xea6   :  { %v1966_v8 = vsub.f32 %v1934_v3, %v1946_v6 }
 0xea8   :  { %v1943_v7 = vpop.xlane.xlu1 %1942  ;;  %v1975_v55 = vmul.f32 1.442695, %v1966_v8 }
 0xea9   :  { %v1965_v12 = vsub.f32 %v1933_v27, %v1943_v7 }
 0xeaa   :  { %3434 = vpow2.f32 %v1975_v55 }
 0xeab   :  { %2133 = vrot.lane.b32.xlu1 %v3936_v29, %s3499_s19  ;;  %v1973_v14 = vmul.f32 1.442695, %v1965_v12 }
 0xead   :  { %3436 = vpow2.f32 %v1973_v14 }
 0xeb0   :  { %2181 = vrot.lane.b32.xlu0 %v3934_v33, %s3499_s19 }
 0xeb4   :  { %v3435_v16 = vpop.eup %3434 }
 0xeb5   :  { %v1992_v18 = vsel %vm242_vm5, %v3435_v16, 0.0 }
 0xeb7   :  { %v3437_v42 = vpop.eup %3436 }
 0xeb8   :  { %v1989_v43 = vsel %vm242_vm5, %v3437_v42, 0.0 }
 0xecf   :  { %1990 = vadd.xlane.f32.xlu0 %v1989_v43  ;;  %1993 = vadd.xlane.f32.xlu1 %v1992_v18 }
 0xee0   :  { %2229 = vrot.lane.b32.xlu1 %v3945_v37, %s3499_s19 }
 0xf17   :  { %v1949_v33 = vpop.xlane.xlu0 %1948  ;;  %v1952_v29 = vpop.xlane.xlu1 %1951 }
 0xf18   :  { %v1967_v19 = vsub.f32 %v1935_v11, %v1949_v33  ;;  %v1968_v3 = vsub.f32 %v1936_v17, %v1952_v29 }
 0xf1a   :  { %v1977_v27 = vmul.f32 1.442695, %v1967_v19  ;;  %v1979_v26 = vmul.f32 1.442695, %v1968_v3 }
 0xf1c   :  { %3438 = vpow2.f32 %v1977_v27 }
 0xf1d   :  { %3440 = vpow2.f32 %v1979_v26 }
 0xf1f   :  { %v1958_v20 = vpop.xlane.xlu1 %1957  ;;  %v1955_v47 = vpop.xlane.xlu0 %1954 }
 0xf20   :  { %v1970_v23 = vsub.f32 %v1938_v39, %v1958_v20  ;;  %v1969_v48 = vsub.f32 %v4014_v38, %v1955_v47 }
 0xf22   :  { %v1983_v24 = vmul.f32 1.442695, %v1970_v23  ;;  %v1981_v52 = vmul.f32 1.442695, %v1969_v48 }
 0xf24   :  { %3442 = vpow2.f32 %v1983_v24 }
 0xf26   :  { %v4032_v31 = vpop.eup %3438 }
 0xf27   :  { %v4034_v51 = vpop.eup %3440  ;;  %v1964_v30 = vpop.xlane.xlu1 %1963  ;;  %v1995_v37 = vsel %vm242_vm5, %v4032_v31, 0.0 }
 0xf28   :  { %v1972_v34 = vsub.f32 %v1940_v56, %v1964_v30  ;;  %1996 = vadd.xlane.f32.xlu0 %v1995_v37  ;;  %v1998_v11 = vsel %vm242_vm5, %v4034_v51, 0.0  ;;  %v1961_v49 = vpop.xlane.xlu0 %1960 }
 0xf29   :  { %1999 = vadd.xlane.f32.xlu1 %v1998_v11  ;;  %v1971_v53 = vsub.f32 %v4019_v41, %v1961_v49 }
 0xf2a   :  { %v1987_v17 = vmul.f32 1.442695, %v1972_v34 }
 0xf2b   :  { %v1985_v50 = vmul.f32 1.442695, %v1971_v53  ;;  %v2134_v22 = vpop.permute.xlu1 %2133 }
 0xf2c   :  { %3444 = vpow2.f32 %v1987_v17  ;;  %v2182_v21 = vpop.permute.xlu0 %2181  ;;  %v2139_v5 = vsel %vm741_vm6, %v2134_v22, 0 }
 0xf2d   :  { %3446 = vpow2.f32 %v1981_v52  ;;  %v2187_v6 = vsel %vm741_vm6, %v2182_v21, 0 }
 0xf2e   :  { %v4040_v35 = vpop.eup %3442  ;;  %3448 = vpow2.f32 %v1985_v50 }
 0xf2f   :  { %v2004_v39 = vsel %vm242_vm5, %v4040_v35, 0.0 }
 0xf30   :  { %2005 = vadd.xlane.f32.xlu1 %v2004_v39 }
 0xf36   :  { %v4044_v40 = vpop.eup %3444 }
 0xf37   :  { %v2010_v44 = vsel %vm242_vm5, %v4044_v40, 0.0  ;;  %v4054_v56 = vpop.eup %3446 }
 0xf38   :  { %2011 = vadd.xlane.f32.xlu1 %v2010_v44  ;;  %v4058_v38 = vpop.eup %3448 }
 0xf3e   :  { %2277 = vrot.lane.b32.xlu0 %v3943_v36, %s3499_s19  ;;  %v2001_v36 = vsel %vm242_vm5, %v4054_v56, 0.0 }
 0xf49   :  { %2325 = vrot.lane.b32.xlu1 %v3955_v46, %s3499_s19  ;;  %v2007_v46 = vsel %vm242_vm5, %v4058_v38, 0.0 }
 0xf5c   :  { %v1991_v54 = vpop.xlane.xlu0 %1990  ;;  %v1994_v57 = vpop.xlane.xlu1 %1993 }
 0xf5d   :  { %3450 = vrcp.f32 %v1991_v54  ;;  %2002 = vadd.xlane.f32.xlu0 %v2001_v36 }
 0xf5e   :  { %3452 = vrcp.f32 %v1994_v57 }
 0xf60   :  { %v2230_v7 = vpop.permute.xlu1 %2229 }
 0xf61   :  { %2008 = vadd.xlane.f32.xlu0 %v2007_v46  ;;  %v2235_v19 = vsel %vm741_vm6, %v2230_v7, 0 }
 0xf67   :  { %v3451_v41 = vpop.eup %3450 }
 0xf68   :  { %v3453_v58 = vpop.eup %3452  ;;  %v2021_v59 = vmul.f32 %v3451_v41, %v3437_v42 }
 0xf69   :  { %v2022_v61 = vmul.f32 %v3453_v58, %v3435_v16 }
 0xf6a   :  { %v2029_v0 = vpack.c.bf16 %v2021_v59, %v2021_v59 }
 0xf6b   :  { %v2030_v2 = vpack.c.bf16 %v2022_v61, %v2022_v61 }
 0xf6c   :  { %3213 = vmatmul.mubr.msk.bf16.vlgmr.msra.gmra.mrb[60].mxu0 %vm242_vm5, %v2029_v0 }
 0xf6d   :  { %3219 = vmatmul.mubr.msk.bf16.vlgmr.msra.gmra.mrb[60].mxu1 %vm242_vm5, %v2030_v2  ;;  %3223 = vmatpush3.bf16.msra.mxu0 %v2139_v5 }
 0xf6e   :  { %3229 = vmatpush3.bf16.msra.mxu1 %v2187_v6  ;;  %3224 = vmatprep.mubr.msk.bf16.mxu0 %vm3503_vm0, %v3502_v1 }
 0xf6f   :  { %3230 = vmatprep.mubr.msk.bf16.mxu1 %vm3503_vm0, %v3502_v1  ;;  %3234 = vmatprep.subr.bf16.mxu0 %v3502_v1 }
 0xf70   :  { %3240 = vmatprep.subr.bf16.mxu1 %v3502_v1 }
 0xf77   :  { %2373 = vrot.lane.b32.xlu0 %v3953_v45, %s3499_s19 }
 0xfb5   :  { %v1997_v8 = vpop.xlane.xlu0 %1996 }
 0xfb6   :  { %3454 = vrcp.f32 %v1997_v8  ;;  %v2000_v12 = vpop.xlane.xlu1 %1999  ;;  %v3384_v8 = vld [vmem:[%s4199_s4 + $0x10] sm:$0xff]  }
 0xfb7   :  { %3456 = vrcp.f32 %v2000_v12 }
 0xfb9   :  { %v2278_v18 = vpop.permute.xlu0 %2277 }
 0xfba   :  { %v2283_v45 = vsel %vm741_vm6, %v2278_v18, 0 }
 0xfbd   :  { %v2006_v55 = vpop.xlane.xlu1 %2005 }
 0xfbe   :  { %3458 = vrcp.f32 %v2006_v55 }
 0xfc0   :  { %v3455_v14 = vpop.eup %3454 }
 0xfc1   :  { %v3457_v16 = vpop.eup %3456  ;;  %v2023_v42 = vmul.f32 %v3455_v14, %v4032_v31 }
 0xfc2   :  { %v2024_v43 = vmul.f32 %v3457_v16, %v4034_v51 }
 0xfc3   :  { %v2031_v33 = vpack.c.bf16 %v2023_v42, %v2023_v42 }
 0xfc4   :  { %v2032_v29 = vpack.c.bf16 %v2024_v43, %v2024_v43  ;;  %v3385_v43 = vld [vmem:[%s4199_s4 + $0x18] sm:$0xff]  }
 0xfc5   :  { %3225 = vmatmul.mubr.msk.bf16.vlgmr.msra.gmra.mrb[64].mxu0 %vm242_vm5, %v2031_v33  ;;  %v2012_v20 = vpop.xlane.xlu1 %2011 }
 0xfc6   :  { %3231 = vmatmul.mubr.msk.bf16.vlgmr.msra.gmra.mrb[64].mxu1 %vm242_vm5, %v2032_v29  ;;  %3235 = vmatpush3.bf16.msra.mxu0 %v2235_v19  ;;  %3460 = vrcp.f32 %v2012_v20 }
 0xfc7   :  { %3241 = vmatpush3.bf16.msra.mxu1 %v2283_v45  ;;  %3242 = vmatprep.mubr.msk.bf16.mxu1 %vm3503_vm0, %v3502_v1 }
 0xfc8   :  { %3252 = vmatprep.subr.bf16.mxu1 %v3502_v1  ;;  %3236 = vmatprep.mubr.msk.bf16.mxu0 %vm3503_vm0, %v3502_v1  ;;  %v3459_v3 = vpop.eup %3458 }
 0xfc9   :  { %3246 = vmatprep.subr.bf16.mxu0 %v3502_v1  ;;  %v2026_v27 = vmul.f32 %v3459_v3, %v4040_v35  ;;  %v2326_v35 = vpop.permute.xlu1 %2325 }
 0xfcb   :  { %v2034_v26 = vpack.c.bf16 %v2026_v27, %v2026_v27 }
 0xfce   :  { %3243 = vmatmul.mubr.msk.bf16.vlgmr.msra.gmra.mrb[68].mxu1 %vm242_vm5, %v2034_v26 }
 0xfcf   :  { %3254 = vmatprep.mubr.msk.bf16.mxu1 %vm3503_vm0, %v3502_v1 }
 0xfd0   :  { %v3461_v24 = vpop.eup %3460 }
 0xfd1   :  { %v2028_v51 = vmul.f32 %v3461_v24, %v4044_v40  ;;  %v2331_v40 = vsel %vm741_vm6, %v2326_v35, 0 }
 0xfd3   :  { %v2036_v11 = vpack.c.bf16 %v2028_v51, %v2028_v51 }
 0xfea   :  { %v2003_v23 = vpop.xlane.xlu0 %2002 }
 0xfeb   :  { %3462 = vrcp.f32 %v2003_v23 }
 0xfee   :  { %v2009_v31 = vpop.xlane.xlu0 %2008 }
 0xfef   :  { %3464 = vrcp.f32 %v2009_v31 }
 0xff2   :  { %v2374_v30 = vpop.permute.xlu0 %2373 }
 0xff3   :  { %v2379_v37 = vsel %vm741_vm6, %v2374_v30, 0 }
 0xff4   :  { %3253 = vmatpush3.bf16.msra.mxu1 %v2379_v37 }
 0xff5   :  { %v3463_v34 = vpop.eup %3462  ;;  %3266 = vmatprep.subr.bf16.mxu1 %v3502_v1 }
 0xff6   :  { %v2025_v17 = vmul.f32 %v3463_v34, %v4054_v56 }
 0xff7   :  { %3255 = vmatmul.mubr.msk.bf16.vlgmr.msra.gmra.mrb[72].mxu1 %vm242_vm5, %v2036_v11 }
 0xff8   :  { %v2033_v39 = vpack.c.bf16 %v2025_v17, %v2025_v17  ;;  %3270 = vmatprep.mubr.msk.bf16.mxu1 %vm3503_vm0, %v3502_v1 }
 0xff9   :  { %v3465_v44 = vpop.eup %3464 }
 0xffa   :  { %3237 = vmatmul.mubr.msk.bf16.vlgmr.msra.gmra.mrb[68].mxu0 %vm242_vm5, %v2033_v39  ;;  %v2027_v47 = vmul.f32 %v3465_v44, %v4058_v38 }
 0xffb   :  { %3247 = vmatpush3.bf16.msra.mxu0 %v2331_v40  ;;  %3248 = vmatprep.mubr.msk.bf16.mxu0 %vm3503_vm0, %v3502_v1 }
 0xffc   :  { %3258 = vmatprep.subr.bf16.mxu0 %v3502_v1  ;;  %v2035_v48 = vpack.c.bf16 %v2027_v47, %v2027_v47 }
0x1002   :  { %3249 = vmatmul.mubr.msk.bf16.vlgmr.msra.gmra.mrb[72].mxu0 %vm242_vm5, %v2035_v48 }
0x1003   :  { %3262 = vmatprep.mubr.msk.bf16.mxu0 %vm3503_vm0, %v3502_v1  ;;  %3259 = vmatpush3.bf16.msra.mxu0 %v3384_v8  ;;  %v3388_v8 = vld [vmem:[%s4201_s6 + $0x20] sm:$0xff]  }
0x1004   :  { %3260 = vmatprep.subr.bf16.mxu0 %v3502_v1 }
0x1007   :  { %3261 = vmatpush3.bf16.msra.mxu0 %v3385_v43 }
0x1008   :  { %3274 = vmatprep.subr.bf16.mxu0 %v3502_v1 }
0x103f   :  { %v2079_v49 = vpop.f32.mrb[60].mxu0 }
0x1040   :  { %v2127_v52 = vpop.f32.mrb[60].mxu1  ;;  %v3214_v53 = vpop.f32.mrb[61].mxu0 }
0x1041   :  { %v3220_v50 = vpop.f32.mrb[61].mxu1  ;;  %v2082_v21 = vpop.f32.mrb[62].mxu0 }
0x1042   :  { %v2130_v22 = vpop.f32.mrb[62].mxu1  ;;  %v3215_v56 = vpop.f32.mrb[63].mxu0 }
0x1043   :  { %v3221_v54 = vpop.f32.mrb[63].mxu1 }
0x1098   :  { %v2175_v57 = vpop.f32.mrb[64].mxu0 }
0x1099   :  { %v2223_v36 = vpop.f32.mrb[64].mxu1  ;;  %v3226_v46 = vpop.f32.mrb[65].mxu0 }
0x109a   :  { %v3353_v38 = vpack.i.bf16 %v2223_v36, %v2175_v57  ;;  %v3232_v41 = vpop.f32.mrb[65].mxu1  ;;  %v2178_v58 = vpop.f32.mrb[66].mxu0 }
0x109b   :  { %v2226_v59 = vpop.f32.mrb[66].mxu1  ;;  %v3227_v61 = vpop.f32.mrb[67].mxu0 }
0x109c   :  { %3354 = vrot.lane.b32.xlu1 %v3353_v38, %s3508_s23  ;;  %v3233_v0 = vpop.f32.mrb[67].mxu1 }
0x10a1   :  { %v2319_v2 = vpop.f32.mrb[68].mxu1 }
0x10a2   :  { %v3244_v5 = vpop.f32.mrb[69].mxu1 }
0x10a3   :  { %v2322_v6 = vpop.f32.mrb[70].mxu1 }
0x10a4   :  { %v3245_v7 = vpop.f32.mrb[71].mxu1 }
0x10a5   :  { %v3387_v7 = vld [vmem:[%s4200_s5 + $0x18] sm:$0xff]  }
0x10ca   :  { %v2415_v12 = vpop.f32.mrb[72].mxu1 }
0x10cb   :  { %v3256_v55 = vpop.f32.mrb[73].mxu1 }
0x10cc   :  { %v2418_v14 = vpop.f32.mrb[74].mxu1 }
0x10cd   :  { %v2271_v16 = vpop.f32.mrb[68].mxu0  ;;  %v3257_v42 = vpop.f32.mrb[75].mxu1 }
0x10ce   :  { %v3358_v18 = vpack.i.bf16 %v2319_v2, %v2271_v16  ;;  %v3238_v33 = vpop.f32.mrb[69].mxu0 }
0x10cf   :  { %v2274_v29 = vpop.f32.mrb[70].mxu0 }
0x10d0   :  { %v3239_v19 = vpop.f32.mrb[71].mxu0  ;;  %3359 = vrot.lane.b32.xlu0 %v3358_v18, %s3509_s7  ;;  %v2548_v29 = vrot.slane %v3924_v13, %v1249_v63  ;;  %v3390_v63 = vld [vmem:[%s4201_s6 + $0x30] sm:$0xff]  }
0x10d5   :  { %v2367_v45 = vpop.f32.mrb[72].mxu0 }
0x10d6   :  { %v3363_v3 = vpack.i.bf16 %v2415_v12, %v2367_v45  ;;  %v3250_v27 = vpop.f32.mrb[73].mxu0  ;;  %v3389_v12 = vld [vmem:[%s4201_s6 + $0x28] sm:$0xff]  }
0x10d7   :  { %v2370_v26 = vpop.f32.mrb[74].mxu0 }
0x10d8   :  { %v3251_v20 = vpop.f32.mrb[75].mxu0  ;;  %3364 = vrot.lane.b32.xlu1 %v3363_v3, %s3510_s28  ;;  %v2554_v26 = vrot.slane %v3924_v13, %v1255_v4  ;;  %v3391_v4 = vld [vmem:[%s4201_s6 + $0x38] sm:$0xff]  }
0x110e   :  { %v3355_v23 = vpop.permute.xlu1 %3354 }
0x110f   :  { %v3357_v31 = vunpack.i.h.bf16 %v3355_v23  ;;  %v3356_v51 = vunpack.i.l.bf16 %v3355_v23 }
0x1111   :  { %v2446_v11 = vsel %vm242_vm5, %v2127_v52, %v3357_v31  ;;  %v2445_v17 = vsel %vm242_vm5, %v2079_v49, %v3356_v51  ;;  %v2460_v49 = vrot.slane %v3924_v13, %v1160_v32  ;;  %v2566_v51 = vrot.slane %v3924_v13, %v1266_v15 }
0x1142   :  { %v3360_v24 = vpop.permute.xlu0 %3359 }
0x1143   :  { %v3362_v30 = vunpack.i.h.bf16 %v3360_v24  ;;  %v3361_v37 = vunpack.i.l.bf16 %v3360_v24 }
0x1145   :  { %v2448_v44 = vsel %vm1147_vm7, %v2446_v11, %v3362_v30  ;;  %v2447_v40 = vsel %vm1147_vm7, %v2445_v17, %v3361_v37 }
0x114a   :  { %v3365_v34 = vpop.permute.xlu1 %3364 }
0x114b   :  { %v3367_v35 = vunpack.i.h.bf16 %v3365_v34  ;;  %v3366_v39 = vunpack.i.l.bf16 %v3365_v34 }
0x114d   :  { %v2450_v47 = vsel %vm1150_vm8, %v2448_v44, %v3367_v35  ;;  %v2449_v48 = vsel %vm1150_vm8, %v2447_v40, %v3366_v39 }
0x114e   :  { %v2451_v53 = vpack.c.bf16 %v2450_v47, %v2449_v48  ;;  %v2638_v47 = vrot.slane %v3924_v13, %v1337_v28 }
0x1150   :  { %3263 = vmatmul.mubr.msk.bf16.vlgmr.msra.gmra.mrb[76].mxu0 %vm166_vm4, %v2451_v53 }
0x1151   :  { %3282 = vmatprep.mubr.msk.bf16.mxu0 %vm3503_vm0, %v3502_v1  ;;  %3275 = vmatpush3.bf16.msra.mxu0 %v3388_v8 }
0x1152   :  { %3276 = vmatprep.subr.bf16.mxu0 %v3502_v1 }
0x1155   :  { %3277 = vmatpush3.bf16.msra.mxu0 %v3389_v12  ;;  %v2738_v12 = vrot.slane %v3924_v13, %v1437_v60 }
0x1156   :  { %3278 = vmatprep.subr.bf16.mxu0 %v3502_v1 }
0x1159   :  { %3279 = vmatpush3.bf16.msra.mxu0 %v3390_v63 }
0x115a   :  { %3280 = vmatprep.subr.bf16.mxu0 %v3502_v1 }
0x115d   :  { %3281 = vmatpush3.bf16.msra.mxu0 %v3391_v4 }
0x1223   :  { %v2510_v52 = vpop.f32.mrb[76].mxu0 }
0x1224   :  { %v2511_v50 = vadd.f32 %v2510_v52, %v2460_v49  ;;  %v3264_v21 = vpop.f32.mrb[77].mxu0 }
0x1225   :  { %v2513_v22 = vpop.f32.mrb[78].mxu0 }
0x1226   :  { %v2514_v56 = vadd.f32 %v2513_v22, %v2460_v49  ;;  %v3265_v54 = vpop.f32.mrb[79].mxu0  ;;  %v2517_v57 = vadd.f32 %v2511_v50, %v3912_v9 }
0x1228   :  { %v2519_v36 = vsel %vm166_vm4, %v2517_v57, 0.0  ;;  %v2518_v46 = vadd.f32 %v2514_v56, %v3914_v10  ;;  %v3386_v10 = vld [vmem:[%s4200_s5 + $0x10] sm:$0xff]  }
0x1229   :  { %2520 = vadd.xlane.f32.xlu0 %v2519_v36  ;;  %3267 = vmatpush3.bf16.msra.mxu1 %v3386_v10 }
0x122a   :  { %v2522_v38 = vsel %vm166_vm4, %v2518_v46, 0.0  ;;  %3268 = vmatprep.subr.bf16.mxu1 %v3502_v1 }
0x122b   :  { %2523 = vadd.xlane.f32.xlu1 %v2522_v38 }
0x122d   :  { %3269 = vmatpush3.bf16.msra.mxu1 %v3387_v7 }
0x122e   :  { %3286 = vmatprep.subr.bf16.mxu1 %v3502_v1 }
0x12b6   :  { %v2521_v41 = vpop.xlane.xlu0 %2520 }
0x12b7   :  { %v2525_v58 = vmul.f32 0.03125, %v2521_v41 }
0x12b8   :  { %v2524_v59 = vpop.xlane.xlu1 %2523 }
0x12b9   :  { %v2527_v32 = vsub.f32 %v2517_v57, %v2525_v58  ;;  %v2526_v61 = vmul.f32 0.03125, %v2524_v59 }
0x12bb   :  { %v2528_v0 = vsub.f32 %v2518_v46, %v2526_v61  ;;  %v2529_v2 = vmul.f32 %v2527_v32, %v2527_v32 }
0x12bd   :  { %v2531_v5 = vsel %vm166_vm4, %v2529_v2, 0.0  ;;  %v2530_v6 = vmul.f32 %v2528_v0, %v2528_v0  ;;  %v3393_v2 = vld [vmem:[#allocation2 + $0x8] sm:$0xff]  }
0x12be   :  { %2532 = vadd.xlane.f32.xlu0 %v2531_v5 }
0x12bf   :  { %v2534_v9 = vsel %vm166_vm4, %v2530_v6, 0.0 }
0x12c2   :  { %2535 = vadd.xlane.f32.xlu0 %v2534_v9 }
0x134b   :  { %v2533_v55 = vpop.xlane.xlu0 %2532 }
0x134c   :  { %v2537_v14 = vmul.f32 0.03125, %v2533_v55 }
0x134e   :  { %v2539_v16 = vadd.f32 1e-05, %v2537_v14 }
0x134f   :  { %v2536_v42 = vpop.xlane.xlu0 %2535 }
0x1350   :  { %3466 = vrsqrt.f32 %v2539_v16  ;;  %v2538_v43 = vmul.f32 0.03125, %v2536_v42 }
0x1352   :  { %v2540_v18 = vadd.f32 1e-05, %v2538_v43 }
0x1354   :  { %3468 = vrsqrt.f32 %v2540_v18 }
0x135a   :  { %v3467_v33 = vpop.eup %3466 }
0x135b   :  { %v2543_v19 = vmul.f32 %v3467_v33, %v2527_v32 }
0x135d   :  { %v2549_v3 = vmul.f32 %v2548_v29, %v2543_v19 }
0x135e   :  { %v3469_v45 = vpop.eup %3468 }
0x135f   :  { %v2544_v27 = vmul.f32 %v3469_v45, %v2528_v0  ;;  %v2555_v23 = vadd.f32 %v2554_v26, %v2549_v3  ;;  %v3392_v0 = vld [vmem:[#allocation2] sm:$0xff]   ;;  %v2906_v45 = vld [vmem:[%s4203_s8 + $0x10] ss:$0 sm:$0xff] }
0x1361   :  { %v2550_v20 = vmul.f32 %v2548_v29, %v2544_v27 }
0x1363   :  { %v2556_v24 = vadd.f32 %v2554_v26, %v2550_v20 }
0x1365   :  { %v2557_v31 = vpack.c.bf16 %v2556_v24, %v2555_v23 }
0x1367   :  { %3271 = vmatmul.mubr.msk.bf16.vlgmr.msra.gmra.mrb[76].mxu1 %vm166_vm4, %v2557_v31 }
0x1368   :  { %3290 = vmatprep.mubr.msk.bf16.mxu1 %vm3503_vm0, %v3502_v1  ;;  %3287 = vmatpush3.bf16.msra.mxu1 %v3392_v0 }
0x1369   :  { %3288 = vmatprep.subr.bf16.mxu1 %v3502_v1  ;;  %v2744_v1 = vrot.slane %v3924_v13, %v1443_v62 }
0x136c   :  { %3289 = vmatpush3.bf16.msra.mxu1 %v3393_v2 }
0x143a   :  { %v2616_v30 = vpop.f32.mrb[76].mxu1 }
0x143b   :  { %v2617_v37 = vadd.f32 %v2616_v30, %v2566_v51  ;;  %v3272_v34 = vpop.f32.mrb[77].mxu1 }
0x143c   :  { %v2619_v11 = vpop.f32.mrb[78].mxu1 }
0x143d   :  { %v2620_v17 = vadd.f32 %v2619_v11, %v2566_v51  ;;  %v3273_v35 = vpop.f32.mrb[79].mxu1  ;;  %v2623_v39 = vmax.f32 %v2617_v37, 0.0 }
0x143f   :  { %v2624_v44 = vmax.f32 %v2620_v17, 0.0 }
0x1441   :  { %v2625_v40 = vpack.c.bf16 %v2624_v44, %v2623_v39 }
0x1443   :  { %3283 = vmatmul.mubr.msk.bf16.vlgmr.msra.gmra.mrb[80].mxu0 %vm100_vm3, %v2625_v40 }
0x1516   :  { %v2700_v48 = vpop.f32.mrb[80].mxu0 }
0x1517   :  { %v2701_v53 = vadd.f32 %v2700_v48, %v2638_v47  ;;  %v3284_v49 = vpop.f32.mrb[81].mxu0 }
0x1518   :  { %v2703_v52 = vpop.f32.mrb[82].mxu0 }
0x1519   :  { %v2704_v15 = vadd.f32 %v2703_v52, %v2638_v47  ;;  %v3285_v50 = vpop.f32.mrb[83].mxu0  ;;  %v2707_v21 = vadd.f32 %v2701_v53, %v2555_v23 }
0x151b   :  { %v2709_v22 = vsel %vm166_vm4, %v2707_v21, 0.0  ;;  %v2708_v56 = vadd.f32 %v2704_v15, %v2556_v24 }
0x151c   :  { %2710 = vadd.xlane.f32.xlu1 %v2709_v22 }
0x151d   :  { %v2712_v54 = vsel %vm166_vm4, %v2708_v56, 0.0 }
0x151e   :  { %2713 = vadd.xlane.f32.xlu0 %v2712_v54 }
0x15a9   :  { %v2711_v57 = vpop.xlane.xlu1 %2710 }
0x15aa   :  { %v2715_v36 = vmul.f32 0.03125, %v2711_v57 }
0x15ab   :  { %v2714_v46 = vpop.xlane.xlu0 %2713 }
0x15ac   :  { %v2717_v38 = vsub.f32 %v2707_v21, %v2715_v36  ;;  %v2716_v41 = vmul.f32 0.03125, %v2714_v46 }
0x15ae   :  { %v2718_v28 = vsub.f32 %v2708_v56, %v2716_v41  ;;  %v2719_v58 = vmul.f32 %v2717_v38, %v2717_v38 }
0x15b0   :  { %v2721_v59 = vsel %vm166_vm4, %v2719_v58, 0.0  ;;  %v2720_v32 = vmul.f32 %v2718_v28, %v2718_v28 }
0x15b1   :  { %2722 = vadd.xlane.f32.xlu1 %v2721_v59 }
0x15b2   :  { %v2724_v61 = vsel %vm166_vm4, %v2720_v32, 0.0 }
0x15b3   :  { %2725 = vadd.xlane.f32.xlu0 %v2724_v61 }
0x163e   :  { %v2723_v5 = vpop.xlane.xlu1 %2722 }
0x163f   :  { %v2727_v6 = vmul.f32 0.03125, %v2723_v5 }
0x1640   :  { %v2726_v9 = vpop.xlane.xlu0 %2725 }
0x1641   :  { %v2729_v10 = vadd.f32 1e-05, %v2727_v6  ;;  %v2728_v7 = vmul.f32 0.03125, %v2726_v9 }
0x1643   :  { %3470 = vrsqrt.f32 %v2729_v10  ;;  %v2730_v8 = vadd.f32 1e-05, %v2728_v7 }
0x1645   :  { %3472 = vrsqrt.f32 %v2730_v8 }
0x164d   :  { %v3471_v55 = vpop.eup %3470 }
0x164e   :  { %v2733_v14 = vmul.f32 %v3471_v55, %v2717_v38 }
0x164f   :  { %v3473_v16 = vpop.eup %3472 }
0x1650   :  { %v2739_v42 = vmul.f32 %v2738_v12, %v2733_v14  ;;  %v2734_v43 = vmul.f32 %v3473_v16, %v2718_v28 }
0x1652   :  { %v2740_v18 = vmul.f32 %v2738_v12, %v2734_v43  ;;  %v2745_v33 = vadd.f32 %v2744_v1, %v2739_v42 }
0x1654   :  { %v2746_v29 = vadd.f32 %v2744_v1, %v2740_v18 }
0x1656   :  { %v2747_v19 = vpack.c.bf16 %v2746_v29, %v2745_v33 }
0x1658   :  { %3291 = vmatmul.mubr.msk.bf16.vlgmr.msra.gmra.mrb[80].mxu1 %vm166_vm4, %v2747_v19 }
0x172b   :  { %v2805_v60 = vpop.f32.mrb[80].mxu1 }
0x172c   :  { %v2806_v3 = vadd.f32 %v2906_v45, %v2805_v60  ;;  %v3292_v27 = vpop.f32.mrb[81].mxu1 }
0x172d   :  { %v2808_v26 = vpop.f32.mrb[82].mxu1 }
0x172e   :  { %2812 = vst [vmem:[%s4204_s9] sm:$0xff] %v2806_v3  ;;  %v2809_v25 = vadd.f32 %v2906_v45, %v2808_v26  ;;  %v3293_v62 = vpop.f32.mrb[83].mxu1 }
0x1730   :  { %2813 = vst [vmem:[%s4204_s9 + $0x8] sm:$0xff] %v2809_v25 }
0x1731   :  { %2818 = vsyncpa [#allocation3], 1 }

</bundles_post_ra>
